<compile_context>
chip_gen: v7x
topology: tpu7x:2x2x1
jax: 0.10.0
libtpu: 0.0.40
codegen_flags: <defaults>
</compile_context>

<pallas_src>
import functools

import jax
import jax.numpy as jnp
from jax.experimental import pallas as pl
from jax.experimental.pallas import tpu as pltpu

LEAKY_SLOPE = 0.01          # nn.LeakyReLU() default
BN_EPS = 1e-5               # nn.BatchNorm2d default eps
SOFTPLUS_THRESHOLD = 20.0   # F.softplus default threshold


def _round_up(x, m):
    return (x + m - 1) // m * m


# ---------------------------------------------------------------------------
# Pallas kernels
# ---------------------------------------------------------------------------
def _conv_mm_kernel(a_ref, w_ref, s_ref, b_ref, o_ref, acc_ref, *, act):
    """Tiled (im2col @ W) with f32 accumulation over the K grid axis.

    BN affine (scale/shift) and the activation run ONCE per output tile, in
    the k==last finalize branch, on the f32 accumulator.
    """
    @pl.when(pl.program_id(2) == 0)
    def _():
        acc_ref[...] = jnp.zeros_like(acc_ref)

    acc_ref[...] += jnp.dot(a_ref[...], w_ref[...],
                            preferred_element_type=jnp.float32)

    @pl.when(pl.program_id(2) == pl.num_programs(2) - 1)
    def _():
        y = acc_ref[...] * s_ref[...] + b_ref[...]
        if act == 'leaky':
            y = jnp.where(y >= 0.0, y, LEAKY_SLOPE * y)
        elif act == 'mish':
            sp = jnp.where(y > SOFTPLUS_THRESHOLD, y,
                           jnp.log1p(jnp.exp(jnp.minimum(y, SOFTPLUS_THRESHOLD))))
            y = y * jnp.tanh(sp)
        # act == 'linear': conv with bias, no BN / activation
        o_ref[...] = y.astype(o_ref.dtype)


def _maxpool_kernel(x_ref, o_ref, *, k, H, W):
    """Running max over k*k window offsets on a VMEM-resident padded tile."""
    m = x_ref[0, 0:H, 0:W, :]
    for i in range(k):
        for j in range(k):
            if i == 0 and j == 0:
                continue
            m = jnp.maximum(m, x_ref[0, i:i + H, j:j + W, :])
    o_ref[0] = m


# ---------------------------------------------------------------------------
# Conv2d + BN(eval, folded) + activation  (NHWC, bf16 matmul, tiled)
# ---------------------------------------------------------------------------
@functools.partial(jax.jit,
                   static_argnames=('k', 'cout', 'stride', 'padding', 'act'))
def conv2d_bn_act(x, wmat, scale, shift, *, k, cout, stride, padding, act):
    """x: (N, H, W, Cin) f32.  wmat: (K_pad, Cout_pad) bf16 (pre-flattened).
    scale/shift: (1, Cout_pad) f32 (zero in padded lanes)."""
    N, H, W, Cin = x.shape
    Ho = (H + 2 * padding - k) // stride + 1
    Wo = (W + 2 * padding - k) // stride + 1

    xb = x.astype(jnp.bfloat16)
    if k == 1 and padding == 0:
        if stride != 1:
            xb = xb[:, ::stride, ::stride, :]
        a = xb.reshape(N * Ho * Wo, Cin)
    else:
        xp = jnp.pad(xb, ((0, 0), (padding, padding), (padding, padding), (0, 0)))
        cols = [xp[:, i:i + stride * (Ho - 1) + 1:stride,
                   j:j + stride * (Wo - 1) + 1:stride, :]
                for i in range(k) for j in range(k)]
        # NHWC patch ordering (ki, kj, cin) matches the weight flattening below.
        a = jnp.concatenate(cols, axis=-1).reshape(N * Ho * Wo, k * k * Cin)

    M, K = a.shape
    K_pad, Cout_pad = wmat.shape

    # Tile sizes: conservative so double-buffered bf16 tiles + f32 accumulator
    # stay well under scoped VMEM on v5e/v6e and under v7x's 64 MiB.
    TM = 256 if M >= 256 else _round_up(M, 16)
    M_pad = _round_up(M, TM)
    TN = 256 if Cout_pad % 256 == 0 else 128
    TK = next(t for t in (512, 384, 256, 128) if K_pad % t == 0)

    a = jnp.pad(a, ((0, M_pad - M), (0, K_pad - K)))

    grid = (M_pad // TM, Cout_pad // TN, K_pad // TK)

    out = pl.pallas_call(
        functools.partial(_conv_mm_kernel, act=act),
        out_shape=jax.ShapeDtypeStruct((M_pad, Cout_pad), jnp.float32),
        grid_spec=pltpu.PrefetchScalarGridSpec(
            num_scalar_prefetch=0,
            grid=grid,
            in_specs=[
                pl.BlockSpec((TM, TK), lambda i, j, kk: (i, kk)),
                pl.BlockSpec((TK, TN), lambda i, j, kk: (kk, j)),
                pl.BlockSpec((1, TN), lambda i, j, kk: (0, j)),
                pl.BlockSpec((1, TN), lambda i, j, kk: (0, j)),
            ],
            out_specs=pl.BlockSpec((TM, TN), lambda i, j, kk: (i, j)),
            scratch_shapes=[pltpu.VMEM((TM, TN), jnp.float32)],
        ),
        compiler_params=pltpu.CompilerParams(
            dimension_semantics=("parallel", "parallel", "arbitrary")),
    )(a, wmat, scale, shift)

    return out[:M, :cout].reshape(N, Ho, Wo, cout)


@functools.partial(jax.jit, static_argnames=('pool_size',))
def maxpool2d_same(x, *, pool_size):
    """Stride-1 max pool, padding = pool_size//2 (-inf padded), NHWC."""
    N, H, W, C = x.shape
    p = pool_size // 2
    xp = jnp.pad(x, ((0, 0), (p, p), (p, p), (0, 0)),
                 constant_values=-jnp.inf)
    TC = 128 if C % 128 == 0 else C
    grid = (N, C // TC)
    return pl.pallas_call(
        functools.partial(_maxpool_kernel, k=pool_size, H=H, W=W),
        out_shape=jax.ShapeDtypeStruct((N, H, W, C), x.dtype),
        grid_spec=pltpu.PrefetchScalarGridSpec(
            num_scalar_prefetch=0,
            grid=grid,
            in_specs=[pl.BlockSpec((1, H + 2 * p, W + 2 * p, TC),
                                   lambda n, c: (n, 0, 0, c))],
            out_specs=pl.BlockSpec((1, H, W, TC), lambda n, c: (n, 0, 0, c)),
        ),
        compiler_params=pltpu.CompilerParams(
            dimension_semantics=("parallel", "parallel")),
    )(xp)


def upsample2x_nearest(x):
    # NHWC nearest-neighbour 2x (nn.Upsample(scale_factor=2) default mode).
    return jnp.repeat(jnp.repeat(x, 2, axis=1), 2, axis=2)


# ---------------------------------------------------------------------------
# Deterministic parameter construction (mirrors the torch module structure)
# ---------------------------------------------------------------------------
class KeyGen:
    def __init__(self, seed=0):
        self._key = jax.random.PRNGKey(seed)
        self._n = 0

    def __call__(self):
        self._n += 1
        return jax.random.fold_in(self._key, self._n)


def conv_batch_p(kg, in_num, out_num, kernel_size=3, padding=1, stride=1,
                 bias=False, activation='leaky'):
    k = kernel_size
    fan_in = in_num * k * k
    w = (jax.random.normal(kg(), (out_num, in_num, k, k))
         * (1.0 / jnp.sqrt(float(fan_in)))).astype(jnp.float32)
    if not bias:
        # BatchNorm in inference mode, folded into per-channel scale/shift.
        gamma = 1.0 + 0.05 * jax.random.normal(kg(), (out_num,))
        beta = 0.05 * jax.random.normal(kg(), (out_num,))
        rmean = 0.05 * jax.random.normal(kg(), (out_num,))
        rvar = 1.0 + 0.05 * jnp.abs(jax.random.normal(kg(), (out_num,)))
        scale = gamma / jnp.sqrt(rvar + BN_EPS)
        shift = beta - rmean * scale
        act = activation
    else:
        scale = jnp.ones((out_num,), jnp.float32)
        shift = 0.02 * jax.random.normal(kg(), (out_num,))
        act = 'linear'

    # Pre-flatten weight ONCE: (Cout,Cin,kh,kw) -> (kh,kw,Cin,Cout) -> (K,Cout),
    # matching the NHWC im2col patch order (ki, kj, cin). Pad K and Cout to
    # multiples of 128 so the matmul is lane-dense; padded lanes get zero
    # scale/shift so garbage never propagates.
    K = k * k * in_num
    K_pad = _round_up(K, 128)
    Cout_pad = _round_up(out_num, 128)
    wmat = w.transpose(2, 3, 1, 0).reshape(K, out_num)
    wmat = jnp.pad(wmat, ((0, K_pad - K), (0, Cout_pad - out_num)))
    wmat = wmat.astype(jnp.bfloat16)
    scale_p = jnp.pad(scale.astype(jnp.float32),
                      (0, Cout_pad - out_num)).reshape(1, Cout_pad)
    shift_p = jnp.pad(shift.astype(jnp.float32),
                      (0, Cout_pad - out_num)).reshape(1, Cout_pad)
    return {'wmat': wmat, 'scale': scale_p, 'shift': shift_p,
            'k': k, 'cout': out_num, 'stride': stride, 'padding': padding,
            'act': act}


def conv_batch_f(p, x):
    return conv2d_bn_act(x, p['wmat'], p['scale'], p['shift'],
                         k=p['k'], cout=p['cout'], stride=p['stride'],
                         padding=p['padding'], act=p['act'])


def seq_f(ps, x):
    for p in ps:
        x = conv_batch_f(p, x)
    return x


def dark_residual_p(kg, in_channels):
    rc = in_channels // 2
    return {'layer1': conv_batch_p(kg, in_channels, rc, kernel_size=1,
                                   padding=0, activation='mish'),
            'layer2': conv_batch_p(kg, rc, in_channels, activation='mish')}


def dark_residual_f(p, x):
    out = conv_batch_f(p['layer1'], x)
    out = conv_batch_f(p['layer2'], out)
    return out + x


def csp_block_p(kg, in_channels, nblocks):
    oc = 2 * in_channels
    return {'layer1': conv_batch_p(kg, in_channels, oc, stride=2,
                                   activation='mish'),
            'split0': conv_batch_p(kg, oc, oc // 2, kernel_size=1, padding=0,
                                   activation='mish'),
            'split1': conv_batch_p(kg, oc, oc // 2, kernel_size=1, padding=0,
                                   activation='mish'),
            'blocks': [dark_residual_p(kg, oc // 2) for _ in range(nblocks)],
            'layer2': conv_batch_p(kg, oc // 2, oc // 2, kernel_size=1,
                                   padding=0, activation='mish')}


def csp_block_f(p, x):
    x = conv_batch_f(p['layer1'], x)
    s0 = conv_batch_f(p['split0'], x)
    s1 = conv_batch_f(p['split1'], x)
    b = s1
    for bp in p['blocks']:
        b = dark_residual_f(bp, b)
    x2 = conv_batch_f(p['layer2'], b)
    return jnp.concatenate([s0, x2], axis=-1)


def csp_darknet53_p(kg, channels=(32, 64, 128, 256, 512)):
    return {'conv1': conv_batch_p(kg, 3, 32, activation='mish'),
            'csp0': csp_block_p(kg, channels[0], 1),
            'csp1': csp_block_p(kg, channels[1], 2),
            'csp2': csp_block_p(kg, channels[2], 8),
            'csp3': csp_block_p(kg, channels[3], 8),
            'csp4': csp_block_p(kg, channels[4], 4)}


def csp_darknet53_f(p, x):
    out = conv_batch_f(p['conv1'], x)
    out = csp_block_f(p['csp0'], out)
    out = csp_block_f(p['csp1'], out)
    out = csp_block_f(p['csp2'], out)
    res8_1 = out
    out = csp_block_f(p['csp3'], out)
    res8_2 = out
    out = csp_block_f(p['csp4'], out)
    return [res8_1, res8_2, out]


def spp_f(x):
    # Stride-1 max pools compose: 5∘5 = 9, 5∘5∘5 = 13.  Cascading replaces the
    # 25+81+169 shifted-copy reduction with three small in-VMEM pools.
    p5 = maxpool2d_same(x, pool_size=5)
    p9 = maxpool2d_same(p5, pool_size=5)
    p13 = maxpool2d_same(p9, pool_size=5)
    # torch order: [pool13, pool9, pool5, x]
    return jnp.concatenate([p13, p9, p5, x], axis=-1)


def convset5_p(kg, in_channels, y=None):
    if y is None:
        y = in_channels
    return [conv_batch_p(kg, in_channels, y // 2, kernel_size=1, padding=0),
            conv_batch_p(kg, y // 2, y),
            conv_batch_p(kg, y, y // 2, kernel_size=1, padding=0),
            conv_batch_p(kg, y // 2, y),
            conv_batch_p(kg, y, y // 2, kernel_size=1, padding=0)]


def upsample_p(kg, in_channels):
    return conv_batch_p(kg, in_channels, in_channels // 2, kernel_size=1,
                        padding=0)


def upsample_f(p, x):
    return upsample2x_nearest(conv_batch_f(p, x))


def predict_p(kg, in_channels, num_classes):
    return {'layer1': conv_batch_p(kg, in_channels, in_channels * 2),
            'layer2': conv_batch_p(kg, in_channels * 2, (num_classes + 5) * 3,
                                   kernel_size=1, padding=0, bias=True),
            'num_classes': num_classes}


def predict_f(p, x):
    out = conv_batch_f(p['layer1'], x)
    out = conv_batch_f(p['layer2'], out)          # (N, H, W, 3*(nc+5))
    N, H, W, _ = out.shape
    nc = p['num_classes']
    return out.reshape(N, H, W, 3, nc + 5).transpose(0, 3, 1, 2, 4)


def yolov4_p(kg, num_classes):
    return {
        'backbone': csp_darknet53_p(kg),
        'cbl1': [conv_batch_p(kg, 1024, 512, kernel_size=1, padding=0),
                 conv_batch_p(kg, 512, 1024),
                 conv_batch_p(kg, 1024, 512, kernel_size=1, padding=0)],
        'cbl2': [conv_batch_p(kg, 2048, 512, kernel_size=1, padding=0),
                 conv_batch_p(kg, 512, 1024),
                 conv_batch_p(kg, 1024, 512, kernel_size=1, padding=0)],
        'upsample1': upsample_p(kg, 512),
        'convset1': convset5_p(kg, 768, 512),
        'upsample2': upsample_p(kg, 256),
        'convset2': convset5_p(kg, 384, 256),
        'cbl3': [conv_batch_p(kg, 128, 256, kernel_size=3, stride=2)],
        'convset3': convset5_p(kg, 512),
        'cbl4': [conv_batch_p(kg, 256, 512, kernel_size=3, stride=2)],
        'convset4': convset5_p(kg, 1024),
        'pred8_1': predict_p(kg, 128, num_classes),
        'pred8_2': predict_p(kg, 256, num_classes),
        'pred4': predict_p(kg, 512, num_classes),
    }


def yolov4_f(p, image):
    # External API is NCHW (like torch); internally everything is NHWC.
    x = image.transpose(0, 2, 3, 1)
    outputs = []
    out = csp_darknet53_f(p['backbone'], x)
    out[2] = seq_f(p['cbl1'], out[2])
    out[2] = spp_f(out[2])
    out[2] = seq_f(p['cbl2'], out[2])
    up1 = upsample_f(p['upsample1'], out[2])
    concat1 = jnp.concatenate([up1, out[1]], axis=-1)
    convset1 = seq_f(p['convset1'], concat1)
    up2 = upsample_f(p['upsample2'], convset1)
    concat2 = jnp.concatenate([up2, out[0]], axis=-1)
    out[0] = seq_f(p['convset2'], concat2)
    outputs.append(predict_f(p['pred8_1'], out[0]))
    cbl3 = seq_f(p['cbl3'], out[0])
    concat3 = jnp.concatenate([cbl3, convset1], axis=-1)
    out[1] = seq_f(p['convset3'], concat3)
    outputs.append(predict_f(p['pred8_2'], out[1]))
    cbl4 = seq_f(p['cbl4'], out[1])
    concat4 = jnp.concatenate([cbl4, out[2]], axis=-1)
    out[2] = seq_f(p['convset4'], concat4)
    outputs.append(predict_f(p['pred4'], out[2]))
    return outputs[::-1]


# TODO(synk): BatchNorm is implemented in inference mode (running stats folded
# into scale/shift); freshly-constructed torch modules default to train-mode
# batch statistics, which is degenerate at these tiny spatial sizes.

if __name__ == "__main__":
    num_classes = 2
    kg = KeyGen(0)
    params = yolov4_p(kg, num_classes)

    image = jax.random.normal(jax.random.PRNGKey(0), (1, 3, 32, 32),
                              dtype=jnp.float32)

    outs = yolov4_f(params, image)
    outs = jax.block_until_ready(outs)

    expected = [(1, 3, 1, 1, num_classes + 5),   # pred4   (stride 32)
                (1, 3, 2, 2, num_classes + 5),   # pred8_2 (stride 16)
                (1, 3, 4, 4, num_classes + 5)]   # pred8_1 (stride 8)
    got = [tuple(o.shape) for o in outs]
    assert got == expected, got
    assert all(bool(jnp.all(jnp.isfinite(o))) for o in outs)
    print("KERNEL_OK")
</pallas_src>

<mosaic_0001>
module attributes {stable_mosaic.version = 11 : i64} {
  func.func @_conv_mm_kernel(%arg0: i32, %arg1: i32, %arg2: i32, %arg3: memref<256x128xbf16, #tpu.memory_space<vmem>>, %arg4: memref<128x128xbf16, #tpu.memory_space<vmem>>, %arg5: memref<1x128xf32, #tpu.memory_space<vmem>>, %arg6: memref<1x128xf32, #tpu.memory_space<vmem>>, %arg7: memref<256x128xf32, #tpu.memory_space<vmem>>, %arg8: memref<256x128xf32, #tpu.memory_space<vmem>>) attributes {dimension_semantics = [#tpu.dimension_semantics<parallel>, #tpu.dimension_semantics<parallel>, #tpu.dimension_semantics<arbitrary>], iteration_bounds = array<i64: 4, 1, 1>, scalar_prefetch = 0 : i64, scratch_operands = 1 : i64, tpu.core_type = #tpu.core_type<tc>, window_params = [{transform_indices = @transform_0, window_bounds = array<i64: 256, 128>}, {transform_indices = @transform_1, window_bounds = array<i64: 128, 128>}, {transform_indices = @transform_2, window_bounds = array<i64: 1, 128>}, {transform_indices = @transform_3, window_bounds = array<i64: 1, 128>}, {transform_indices = @transform_4, window_bounds = array<i64: 256, 128>}]} {
    %c0_i32 = arith.constant 0 : i32
    %0 = arith.cmpi eq, %arg2, %c0_i32 : i32
    %1 = arith.extui %0 : i1 to i32
    %c0_i32_0 = arith.constant 0 : i32
    %2 = arith.cmpi ne, %1, %c0_i32_0 : i32
    scf.if %2 {
      %cst_10 = arith.constant 0.000000e+00 : f32
      %12 = vector.broadcast %cst_10 : f32 to vector<256x128xf32>
      %c0_11 = arith.constant 0 : index
      %c0_12 = arith.constant 0 : index
      %13 = vector.load %arg8[%c0_11, %c0_12] : memref<256x128xf32, #tpu.memory_space<vmem>>, vector<256x128xf32>
      tpu.vector_store %arg8[%c0_11, %c0_12], %12 {strides = array<i32>} : memref<256x128xf32, #tpu.memory_space<vmem>>, vector<256x128xf32>,
    } else {
    }
    %c0 = arith.constant 0 : index
    %c0_1 = arith.constant 0 : index
    %3 = vector.load %arg8[%c0, %c0_1] : memref<256x128xf32, #tpu.memory_space<vmem>>, vector<256x128xf32>
    %c0_2 = arith.constant 0 : index
    %c0_3 = arith.constant 0 : index
    %4 = vector.load %arg3[%c0_2, %c0_3] : memref<256x128xbf16, #tpu.memory_space<vmem>>, vector<256x128xbf16>
    %c0_4 = arith.constant 0 : index
    %c0_5 = arith.constant 0 : index
    %5 = vector.load %arg4[%c0_4, %c0_5] : memref<128x128xbf16, #tpu.memory_space<vmem>>, vector<128x128xbf16>
    %cst = arith.constant dense<0.000000e+00> : vector<256x128xf32>
    %6 = tpu.matmul %4, %5, %cst {dimension_numbers = #tpu.dot_dimension_numbers<[1], [0], [0], [1], [0, 0, 1, 1], [], []>} : vector<256x128xbf16>, vector<128x128xbf16>, vector<256x128xf32> -> vector<256x128xf32>
    %7 = arith.addf %3, %6 : vector<256x128xf32>
    %c0_6 = arith.constant 0 : index
    %c0_7 = arith.constant 0 : index
    %8 = vector.load %arg8[%c0_6, %c0_7] : memref<256x128xf32, #tpu.memory_space<vmem>>, vector<256x128xf32>
    tpu.vector_store %arg8[%c0_6, %c0_7], %7 {strides = array<i32>} : memref<256x128xf32, #tpu.memory_space<vmem>>, vector<256x128xf32>,
    %c0_i32_8 = arith.constant 0 : i32
    %9 = arith.cmpi eq, %arg2, %c0_i32_8 : i32
    %10 = arith.extui %9 : i1 to i32
    %c0_i32_9 = arith.constant 0 : i32
    %11 = arith.cmpi ne, %10, %c0_i32_9 : i32
    scf.if %11 {
      %c0_10 = arith.constant 0 : index
      %c0_11 = arith.constant 0 : index
      %12 = vector.load %arg8[%c0_10, %c0_11] : memref<256x128xf32, #tpu.memory_space<vmem>>, vector<256x128xf32>
      %c0_12 = arith.constant 0 : index
      %c0_13 = arith.constant 0 : index
      %13 = vector.load %arg5[%c0_12, %c0_13] : memref<1x128xf32, #tpu.memory_space<vmem>>, vector<1x128xf32>
      %14 = vector.broadcast %13 : vector<1x128xf32> to vector<256x128xf32>
      %15 = arith.mulf %12, %14 : vector<256x128xf32>
      %c0_14 = arith.constant 0 : index
      %c0_15 = arith.constant 0 : index
      %16 = vector.load %arg6[%c0_14, %c0_15] : memref<1x128xf32, #tpu.memory_space<vmem>>, vector<1x128xf32>
      %17 = vector.broadcast %16 : vector<1x128xf32> to vector<256x128xf32>
      %18 = arith.addf %15, %17 : vector<256x128xf32>
      %cst_16 = arith.constant 2.000000e+01 : f32
      %19 = vector.broadcast %cst_16 : f32 to vector<256x128xf32>
      %20 = arith.cmpf ogt, %18, %19 : vector<256x128xf32>
      %cst_17 = arith.constant 2.000000e+01 : f32
      %21 = vector.broadcast %cst_17 : f32 to vector<256x128xf32>
      %22 = arith.minimumf %18, %21 : vector<256x128xf32>
      %23 = math.exp %22 : vector<256x128xf32>
      %24 = math.log1p %23 : vector<256x128xf32>
      %25 = arith.select %20, %18, %24 : vector<256x128xi1>, vector<256x128xf32>
      %26 = math.tanh %25 : vector<256x128xf32>
      %27 = arith.mulf %18, %26 : vector<256x128xf32>
      %c0_18 = arith.constant 0 : index
      %c0_19 = arith.constant 0 : index
      %28 = vector.load %arg7[%c0_18, %c0_19] : memref<256x128xf32, #tpu.memory_space<vmem>>, vector<256x128xf32>
      tpu.vector_store %arg7[%c0_18, %c0_19], %27 {strides = array<i32>} : memref<256x128xf32, #tpu.memory_space<vmem>>, vector<256x128xf32>,
    } else {
    }
    return
  }
  func.func @transform_0(%arg0: i32, %arg1: i32, %arg2: i32) -> (i32, i32) {
    %c0_i32 = arith.constant 0 : i32
    return %arg0, %arg2 : i32, i32
  }
  func.func @transform_1(%arg0: i32, %arg1: i32, %arg2: i32) -> (i32, i32) {
    %c0_i32 = arith.constant 0 : i32
    return %arg2, %arg1 : i32, i32
  }
  func.func @transform_2(%arg0: i32, %arg1: i32, %arg2: i32) -> (i32, i32) {
    %c0_i32 = arith.constant 0 : i32
    %c0_i32_0 = arith.constant 0 : i32
    return %c0_i32, %arg1 : i32, i32
  }
  func.func @transform_3(%arg0: i32, %arg1: i32, %arg2: i32) -> (i32, i32) {
    %c0_i32 = arith.constant 0 : i32
    %c0_i32_0 = arith.constant 0 : i32
    return %c0_i32, %arg1 : i32, i32
  }
  func.func @transform_4(%arg0: i32, %arg1: i32, %arg2: i32) -> (i32, i32) {
    %c0_i32 = arith.constant 0 : i32
    return %arg0, %arg1 : i32, i32
  }
}

</mosaic_0001>

<bundles_post_ra>
// kernel: conv2d_bn_act.1
= control target key start
LH: loop header
LB: loop body
LE: loop exit
PB: predicated region body
PF: predicated region fallthrough
CT: control target
= control target key end

     0   :  { %9 = vsyncpa [#allocation4], 0  ;;  %s2901_s0 = inlined_call_operand.vmem [shape: bf16[1024,128], index: 0, kind: input, shape index: {}]   ;;  %s2902_s1 = inlined_call_operand.vmem [shape: bf16[128,128], index: 1, kind: input, shape index: {}]   ;;  %s2903_s2 = inlined_call_operand.vmem [shape: f32[1,128], index: 2, kind: input, shape index: {}]   ;;  %s2904_s3 = inlined_call_operand.vmem [shape: f32[1,128], index: 3, kind: input, shape index: {}]   ;;  %s2905_s4 = inlined_call_operand.hbm [shape: f32[1024,128], index: 4, kind: output, shape index: {}]  }
   0x1   :  { %11 = vsyncpa [#allocation4 + $0x1], 0  ;;  %s2084_s15 = smov 0   ;;  %s2086_s16 = smov 0  }
   0x2   :  { %s2088_s17 = smov 0   ;;  %s2090_s18 = smov 0  }
   0x3   :  { %s2092_s19 = smov 0   ;;  %s2094_s20 = smov 0  }
   0x4 LB: > { %s1570_s21 = sadd.s32 4294967295, %s2054_s20   ;;  %s1571_s22 = sadd.s32 4294967294, %s2054_s20   ;;  %s2054_s20 = sphi %s2094_s20, %s17_s20   ;;  %s2050_s19 = sphi %s2092_s19, %s2963_s19   ;;  %s2046_s18 = sphi %s2090_s18, %s2962_s18   ;;  %s2042_s17 = sphi %s2088_s17, %s2961_s17   ;;  %s2038_s16 = sphi %s2086_s16, %s2960_s16   ;;  %s2034_s15 = sphi %s2084_s15, %s2959_s15  }
   0x5   : > { %s36_s23 = sadd.s32 1, %s2050_s19  ;;  %s153_s24 = sadd.s32 1, %s2042_s17 }
   0x6   : > { %p38_p0 = scmp.ge.s32.totalorder %s36_s23, 4  ;;  %p163_p1 = scmp.ne.s32.totalorder %s2042_s17, %s2038_s16 }
   0x7   : > { %p164_p2 = scmp.eq.s32.totalorder %s1570_s21, 3  ;;  %p169_p3 = scmp.ne.s32.totalorder %s2038_s16, %s2034_s15 }
   0x8   : > { %s2965_s23 = smov (%p38_p0, %s36_s23), 0  ;;  %p170_p5 = scmp.eq.s32.totalorder %s1571_s22, 3 }
   0x9   : > { %p2124_p4 = por %p164_p2, %p163_p1  ;;  %s148_s26 = ssub.s32 %s2050_s19, %s2965_s23 }
   0xa   : > { %p1577_p6 = scmp.ge.s32.totalorder %s2054_s20, 1  ;;  %p151_p7 = scmp.eq.s32.totalorder %s148_s26, 0 }
   0xb   : > { %p2131_p8 = por %p170_p5, %p169_p3  ;;  %p224_p9 = scmp.lt.s32.totalorder %s2054_s20, 5 }
   0xc   : > { %s2137_s28 = scalar_select %p151_p7, %s2042_s17, %s153_s24  }
   0xd   : > { %p225_p10 = pnand %p1577_p6, %p224_p9 }
   0xf   : > { %228 = sbr.rel (%p225_p10) target bundleno = 456 (0x1c8), region = 36 }
  0x16   : > { %v1758_v0 = vld [vmem:[%s2902_s1] sm:$0xff]   ;;  %s1579_s5 = sshll.u32 %s2046_s18, 5  ;;  %v1759_v1 = vld [vmem:[%s2902_s1 + $0x8] sm:$0xff]   ;;  %v1760_v2 = vld [vmem:[%s2902_s1 + $0x10] sm:$0xff]   ;;  %s264_s12 = sand.u32 1, %s2038_s16  }
  0x17   : > { %p268_p11 = scmp.lt.s32.totalorder %s1579_s5, 127  ;;  %1637 = vmatprep.subr.bf16.mxu0 %v1758_v0  ;;  %1685 = vmatprep.subr.bf16.mxu1 %v1758_v0  ;;  %v1761_v3 = vld [vmem:[%s2902_s1 + $0x18] sm:$0xff]   ;;  %v1762_v6 = vld [vmem:[%s2902_s1 + $0x20] sm:$0xff]   ;;  %v1763_v7 = vld [vmem:[%s2902_s1 + $0x28] sm:$0xff]   ;;  %s1612_s29 = sshll.u32 %s2046_s18, 12 }
  0x18   : > { %1638 = vmatpush3.bf16.msra.mxu0 %v1758_v0  ;;  %1693 = vmatpush3.bf16.msra.mxu1 %v1758_v0  ;;  %v1764_v8 = vld [vmem:[%s2902_s1 + $0x30] sm:$0xff]   ;;  %v1765_v9 = vld [vmem:[%s2902_s1 + $0x38] sm:$0xff]   ;;  %v2188_v24 = vld [vmem:[%s2903_s2] ss:$0 sm:$0xff]  ;;  %s2847_s7 = scalar_lea.hbm %s2905_s4, %s1612_s29  ;;  %s2855_s18 = scalar_lea.sflag [#allocation4], %s264_s12 }
  0x19   : > { %s2967_s5 = smov (!%p268_p11, %s1579_s5), 127  ;;  %1639 = vmatprep.subr.bf16.mxu0 %v1759_v1  ;;  %1686 = vmatprep.subr.bf16.mxu1 %v1759_v1  ;;  %v2193_v26 = vld [vmem:[%s2904_s3] ss:$0 sm:$0xff]  ;;  %s2056_s9 = smov [#allocation3]  }
  0x1a   : > { %s1580_s10 = sshll.u32 %s2967_s5, 2 }
  0x1b   : > { %s2152_s13 = scalar_lea.vmem %s2901_s0, %s1580_s10  ;;  %s1980_s10 = sshll.u32 %s2056_s9, 4  ;;  %s1981_s10 = int_to_ptr.vmem [resolvable:$false] %s1980_s10 }
  0x1c   : > { %1640 = vmatpush3.bf16.msra.mxu0 %v1759_v1  ;;  %1694 = vmatpush3.bf16.msra.mxu1 %v1759_v1  ;;  %v1766_v4 = vld [vmem:[%s2152_s13] sm:$0xff]   ;;  %v1768_v10 = vld [vmem:[%s2152_s13 + $0x8] sm:$0xff]   ;;  %v1770_v12 = vld [vmem:[%s2152_s13 + $0x10] sm:$0xff]   ;;  %s1982_s11 = scalar_lea.vmem %s1981_s10, 8192 }
  0x1d   : > { %1641 = vmatprep.subr.bf16.mxu0 %v1760_v2  ;;  %1687 = vmatprep.subr.bf16.mxu1 %v1760_v2  ;;  %v1767_v5 = vld [vmem:[%s2152_s13 + $0x40] sm:$0xff]   ;;  %v1769_v11 = vld [vmem:[%s2152_s13 + $0x48] sm:$0xff]   ;;  %v1771_v13 = vld [vmem:[%s2152_s13 + $0x50] sm:$0xff]  }
  0x1e   : > { %1653 = vmatprep.mubr.bf16.mxu0 %v1766_v4  ;;  %1669 = vmatprep.mubr.bf16.mxu1 %v1767_v5  ;;  %v1772_v14 = vld [vmem:[%s2152_s13 + $0x18] sm:$0xff]   ;;  %v1774_v16 = vld [vmem:[%s2152_s13 + $0x20] sm:$0xff]   ;;  %v1776_v18 = vld [vmem:[%s2152_s13 + $0x28] sm:$0xff]  }
  0x1f   : > { %v1773_v15 = vld [vmem:[%s2152_s13 + $0x58] sm:$0xff]   ;;  %v1775_v17 = vld [vmem:[%s2152_s13 + $0x60] sm:$0xff]   ;;  %v1777_v19 = vld [vmem:[%s2152_s13 + $0x68] sm:$0xff]  }
  0x20   : > { %1642 = vmatpush3.bf16.msra.mxu0 %v1760_v2  ;;  %1695 = vmatpush3.bf16.msra.mxu1 %v1760_v2  ;;  %v1778_v20 = vld [vmem:[%s2152_s13 + $0x30] sm:$0xff]   ;;  %v1780_v22 = vld [vmem:[%s2152_s13 + $0x38] sm:$0xff]  }
  0x21   : > { %1643 = vmatprep.subr.bf16.mxu0 %v1761_v3  ;;  %1688 = vmatprep.subr.bf16.mxu1 %v1761_v3  ;;  %v1779_v21 = vld [vmem:[%s2152_s13 + $0x70] sm:$0xff]   ;;  %v1781_v23 = vld [vmem:[%s2152_s13 + $0x78] sm:$0xff]   ;;  %s1578_s13 = sshll.u32 %s264_s12, 8 }
  0x22   : > { %s2438_s14 = scalar_lea.vmem [#allocation3], %s1578_s13 }
  0x23   : > { %s1450_s30 = sshll.u32 %s2438_s14, 4  ;;  %s2849_s30 = int_to_ptr.vmem [resolvable:$true] %s1450_s30 }
  0x24   : > { %1644 = vmatpush3.bf16.msra.mxu0 %v1761_v3  ;;  %1696 = vmatpush3.bf16.msra.mxu1 %v1761_v3  ;;  %s1976_s8 = scalar_lea.vmem %s2849_s30, 4096  ;;  %p1983_p1 = scmp.lt.s32.totalorder %s2849_s30, %s1981_s10 }
  0x25   : > { %1645 = vmatprep.subr.bf16.mxu0 %v1762_v6  ;;  %1689 = vmatprep.subr.bf16.mxu1 %v1762_v6  ;;  %p1977_p12 = scmp.ne.s32.totalorder %s2849_s30, %s1976_s8  ;;  %p1984_p2 = scmp.lt.s32.totalorder %s1982_s11, %s1976_s8 }
  0x27   : > { %p1978_p13 = pnand %p1977_p12, %p2124_p4  ;;  %p1985_p3 = por %p1984_p2, %p1983_p1 }
  0x28   : > { %1646 = vmatpush3.bf16.msra.mxu0 %v1762_v6  ;;  %1697 = vmatpush3.bf16.msra.mxu1 %v1762_v6 }
  0x29   : > { %1647 = vmatprep.subr.bf16.mxu0 %v1763_v7  ;;  %1690 = vmatprep.subr.bf16.mxu1 %v1763_v7  ;;  %p1979_p0 = pneg %p1978_p13 }
  0x2b   : > { %p1986_p5 = pnand %p1985_p3, %p1979_p0 }
  0x2c   : > { %1648 = vmatpush3.bf16.msra.mxu0 %v1763_v7  ;;  %1698 = vmatpush3.bf16.msra.mxu1 %v1763_v7 }
  0x2d   : > { %1649 = vmatprep.subr.bf16.mxu0 %v1764_v8  ;;  %1691 = vmatprep.subr.bf16.mxu1 %v1764_v8 }
  0x30   : > { %1650 = vmatpush3.bf16.msra.mxu0 %v1764_v8  ;;  %1699 = vmatpush3.bf16.msra.mxu1 %v1764_v8 }
  0x31   : > { %1651 = vmatprep.subr.bf16.mxu0 %v1765_v9  ;;  %1692 = vmatprep.subr.bf16.mxu1 %v1765_v9 }
  0x34   : > { %1652 = vmatpush3.bf16.msra.mxu0 %v1765_v9  ;;  %1700 = vmatpush3.bf16.msra.mxu1 %v1765_v9 }
  0x37   : > { %1654 = vmatmul.mubr.bf16.vlgmr.msra.gmra.mrb[0].mxu0 %v1768_v10  ;;  %1670 = vmatmul.mubr.bf16.vlgmr.msra.gmra.mrb[0].mxu1 %v1769_v11 }
  0x38   : > { %1657 = vmatprep.mubr.bf16.mxu0 %v1770_v12  ;;  %1673 = vmatprep.mubr.bf16.mxu1 %v1771_v13 }
  0x3f   : > { %1658 = vmatmul.mubr.bf16.gmra.mrb[4].mxu0 %v1772_v14  ;;  %1674 = vmatmul.mubr.bf16.gmra.mrb[4].mxu1 %v1773_v15 }
  0x40   : > { %1661 = vmatprep.mubr.bf16.mxu0 %v1774_v16  ;;  %1677 = vmatprep.mubr.bf16.mxu1 %v1775_v17 }
  0x47   : > { %1662 = vmatmul.mubr.bf16.gmra.mrb[8].mxu0 %v1776_v18  ;;  %1678 = vmatmul.mubr.bf16.gmra.mrb[8].mxu1 %v1777_v19 }
  0x48   : > { %1665 = vmatprep.mubr.bf16.mxu0 %v1778_v20  ;;  %1681 = vmatprep.mubr.bf16.mxu1 %v1779_v21 }
  0x4f   : > { %1666 = vmatmul.mubr.bf16.gmra.mrb[12].mxu0 %v1780_v22  ;;  %1682 = vmatmul.mubr.bf16.gmra.mrb[12].mxu1 %v1781_v23 }
 0x10a   : > { %v1655_v25 = vpop.f32.mrb[0].mxu0  ;;  %v1671_v27 = vpop.f32.mrb[0].mxu1 }
 0x10b   : > { %v822_v28 = vmul.f32 %v1655_v25, %v2188_v24  ;;  %v838_v29 = vmul.f32 %v1671_v27, %v2188_v24  ;;  %v587_v30 = vpop.f32.mrb[1].mxu0  ;;  %v651_v31 = vpop.f32.mrb[1].mxu1 }
 0x10c   : > { %v820_v32 = vmul.f32 %v2188_v24, %v587_v30  ;;  %v836_v33 = vmul.f32 %v2188_v24, %v651_v31  ;;  %v1656_v34 = vpop.f32.mrb[2].mxu0  ;;  %v1672_v35 = vpop.f32.mrb[2].mxu1 }
 0x10d   : > { %v2200_v36 = vadd.f32 %v2193_v26, %v822_v28  ;;  %v2203_v37 = vadd.f32 %v2193_v26, %v838_v29  ;;  %v823_v38 = vmul.f32 %v1656_v34, %v2188_v24  ;;  %v839_v39 = vmul.f32 %v1672_v35, %v2188_v24  ;;  %v590_v40 = vpop.f32.mrb[3].mxu0  ;;  %v654_v41 = vpop.f32.mrb[3].mxu1 }
 0x10e   : > { %v2208_v42 = vadd.f32 %v2193_v26, %v820_v32  ;;  %v2211_v43 = vadd.f32 %v2193_v26, %v836_v33  ;;  %v821_v44 = vmul.f32 %v2188_v24, %v590_v40  ;;  %v837_v45 = vmul.f32 %v2188_v24, %v654_v41 }
 0x10f   : > { %v925_v46 = vmin.f32 %v2200_v36, 20.0  ;;  %v941_v47 = vmin.f32 %v2203_v37, 20.0  ;;  %v2220_v52 = vadd.f32 %v2193_v26, %v823_v38  ;;  %v2223_v53 = vadd.f32 %v2193_v26, %v839_v39 }
 0x110   : > { %v923_v48 = vmin.f32 %v2208_v42, 20.0  ;;  %v939_v49 = vmin.f32 %v2211_v43, 20.0  ;;  %v2226_v56 = vadd.f32 %v2193_v26, %v821_v44  ;;  %v2229_v57 = vadd.f32 %v2193_v26, %v837_v45 }
 0x111   : > { %v959_v50 = vmul.f32 1.442695, %v925_v46  ;;  %v991_v51 = vmul.f32 1.442695, %v941_v47  ;;  %v926_v60 = vmin.f32 %v2220_v52, 20.0  ;;  %v942_v63 = vmin.f32 %v2223_v53, 20.0 }
 0x112   : > { %v955_v54 = vmul.f32 1.442695, %v923_v48  ;;  %v987_v55 = vmul.f32 1.442695, %v939_v49  ;;  %v1659_v58 = vpop.f32.mrb[4].mxu0  ;;  %v1675_v59 = vpop.f32.mrb[4].mxu1 }
 0x113   : > { %1782 = vpow2.f32 %v959_v50  ;;  %v603_v61 = vpop.f32.mrb[5].mxu0  ;;  %v667_v62 = vpop.f32.mrb[5].mxu1  ;;  %v924_v0 = vmin.f32 %v2226_v56, 20.0  ;;  %v961_v3 = vmul.f32 1.442695, %v926_v60  ;;  %v940_v4 = vmin.f32 %v2229_v57, 20.0 }
 0x114   : > { %1784 = vpow2.f32 %v991_v51  ;;  %v1660_v1 = vpop.f32.mrb[6].mxu0  ;;  %v1676_v2 = vpop.f32.mrb[6].mxu1  ;;  %v993_v7 = vmul.f32 1.442695, %v942_v63  ;;  %v826_v9 = vmul.f32 %v1659_v58, %v2188_v24  ;;  %v842_v10 = vmul.f32 %v1675_v59, %v2188_v24 }
 0x115   : > { %1786 = vpow2.f32 %v955_v54  ;;  %v2235_v5 = vpop.f32.mrb[7].mxu0  ;;  %v2237_v6 = vpop.f32.mrb[7].mxu1  ;;  %v957_v8 = vmul.f32 1.442695, %v924_v0  ;;  %v824_v11 = vmul.f32 %v2188_v24, %v603_v61  ;;  %v989_v12 = vmul.f32 1.442695, %v940_v4 }
 0x116   : > { %1788 = vpow2.f32 %v987_v55  ;;  %v2243_v13 = vadd.f32 %v2193_v26, %v826_v9  ;;  %v840_v14 = vmul.f32 %v2188_v24, %v667_v62  ;;  %v2247_v15 = vadd.f32 %v2193_v26, %v842_v10 }
 0x117   : > { %1790 = vpow2.f32 %v961_v3  ;;  %v2251_v17 = vadd.f32 %v2193_v26, %v824_v11  ;;  %v827_v30 = vmul.f32 %v1660_v1, %v2188_v24  ;;  %v843_v38 = vmul.f32 %v1676_v2, %v2188_v24 }
 0x118   : > { %1792 = vpow2.f32 %v993_v7  ;;  %v929_v16 = vmin.f32 %v2243_v13, 20.0  ;;  %v945_v20 = vmin.f32 %v2247_v15, 20.0  ;;  %v2263_v25 = vadd.f32 %v2193_v26, %v840_v14 }
 0x119   : > { %1794 = vpow2.f32 %v957_v8  ;;  %v927_v35 = vmin.f32 %v2251_v17, 20.0  ;;  %v2280_v55 = vadd.f32 %v2193_v26, %v827_v30  ;;  %v2285_v60 = vadd.f32 %v2193_v26, %v843_v38 }
 0x11a   : > { %v2253_v18 = vpop.f32.mrb[8].mxu0  ;;  %v2255_v19 = vpop.f32.mrb[8].mxu1  ;;  %1796 = vpow2.f32 %v989_v12  ;;  %v967_v23 = vmul.f32 1.442695, %v929_v16  ;;  %v999_v45 = vmul.f32 1.442695, %v945_v20 }
 0x11b   : > { %v2258_v21 = vpop.f32.mrb[9].mxu0  ;;  %v2260_v22 = vpop.f32.mrb[9].mxu1  ;;  %v2282_v59 = vmul.f32 1.442695, %v927_v35  ;;  %vm893_vm1 = vcmp.gt.f32.partialorder %v2200_v36, 20.0  ;;  %vm909_vm3 = vcmp.gt.f32.partialorder %v2203_v37, 20.0 }
 0x11c   : > { %v2265_v27 = vpop.f32.mrb[10].mxu0  ;;  %v2267_v28 = vpop.f32.mrb[10].mxu1  ;;  %1798 = vpow2.f32 %v967_v23  ;;  %vm891_vm4 = vcmp.gt.f32.partialorder %v2208_v42, 20.0  ;;  %vm907_vm6 = vcmp.gt.f32.partialorder %v2211_v43, 20.0  ;;  %vm894_vm9 = vcmp.gt.f32.partialorder %v2220_v52, 20.0 }
 0x11d   : > { %v1783_v29 = vpop.eup %1782  ;;  %v2270_v31 = vpop.f32.mrb[11].mxu0  ;;  %vm910_vm11 = vcmp.gt.f32.partialorder %v2223_v53, 20.0  ;;  %vm892_vm12 = vcmp.gt.f32.partialorder %v2226_v56, 20.0  ;;  %vm908_vm13 = vcmp.gt.f32.partialorder %v2229_v57, 20.0 }
 0x11e   : > { %v2272_v32 = vpop.f32.mrb[11].mxu1  ;;  %v1785_v33 = vpop.eup %1784  ;;  %v1037_v34 = vadd.f32 1.0, %v1783_v29  ;;  %v1040_v40 = vmul.f32 -0.5, %v1783_v29  ;;  %v1043_v47 = vand.u32 2147483647, %v1783_v29 }
 0x11f   : > { %v1787_v39 = vpop.eup %1786  ;;  %v1181_v41 = vadd.f32 1.0, %v1785_v33  ;;  %v1184_v44 = vmul.f32 -0.5, %v1785_v33  ;;  %v1187_v51 = vand.u32 2147483647, %v1785_v33 }
 0x120   : > { %v1789_v46 = vpop.eup %1788  ;;  %1800 = vlog2.f32 %v1037_v34  ;;  %v1019_v48 = vadd.f32 1.0, %v1787_v39  ;;  %v1022_v54 = vmul.f32 -0.5, %v1787_v39  ;;  %v1041_v0 = vadd.f32 1.0, %v1040_v40 }
 0x121   : > { %v2277_v50 = vpop.eup %1790  ;;  %1802 = vlog2.f32 %v1181_v41  ;;  %v1163_v58 = vadd.f32 1.0, %v1789_v46  ;;  %v1185_v1 = vadd.f32 1.0, %v1184_v44  ;;  %v1166_v2 = vmul.f32 -0.5, %v1789_v46 }
 0x122   : > { %1804 = vlog2.f32 %v1019_v48  ;;  %v2287_v61 = vpop.f32.mrb[12].mxu0  ;;  %v2289_v62 = vpop.f32.mrb[12].mxu1  ;;  %vm2297_vm0 = vcmp.lt.f32.partialorder %v1043_v47, 0.0004427343  ;;  %v1025_v9 = vand.u32 2147483647, %v1787_v39  ;;  %v2314_v34 = vmul.f32 %v2188_v24, %v2235_v5 }
 0x123   : > { %v1793_v63 = vpop.eup %1792  ;;  %1806 = vpow2.f32 %v999_v45  ;;  %v2291_v3 = vpop.f32.mrb[13].mxu0  ;;  %v1046_v10 = vadd.f32 1.0, %v2277_v50  ;;  %v1049_v11 = vmul.f32 -0.5, %v2277_v50  ;;  %vm2308_vm2 = vcmp.lt.f32.partialorder %v1187_v51, 0.0004427343 }
 0x124   : > { %v2293_v4 = vpop.f32.mrb[13].mxu1  ;;  %v2295_v7 = vpop.eup %1794  ;;  %1808 = vlog2.f32 %v1163_v58  ;;  %v1023_v20 = vadd.f32 1.0, %v1022_v54  ;;  %v1167_v23 = vadd.f32 1.0, %v1166_v2  ;;  %v1169_v30 = vand.u32 2147483647, %v1789_v46 }
 0x125   : > { %v2303_v12 = vpop.f32.mrb[14].mxu0  ;;  %v2305_v14 = vpop.f32.mrb[14].mxu1  ;;  %1810 = vlog2.f32 %v1046_v10  ;;  %v1052_v40 = vand.u32 2147483647, %v2277_v50  ;;  %v1190_v41 = vadd.f32 1.0, %v1793_v63  ;;  %v1193_v44 = vmul.f32 -0.5, %v1793_v63 }
 0x126   : > { %2910 = vst [vmem:[#allocation6_spill] sm:$0xff] %v2303_v12  ;;  %2911 = vst [vmem:[#allocation7_spill] sm:$0xff] %v2305_v14  ;;  %v2316_v35 = vpop.f32.mrb[15].mxu0  ;;  %v2318_v38 = vpop.eup %1796  ;;  %v1042_v47 = vmul.f32 %v1783_v29, %v1041_v0  ;;  %v1186_v48 = vmul.f32 %v1785_v33, %v1185_v1  ;;  %v1050_v51 = vadd.f32 1.0, %v1049_v11  ;;  %v1028_v5 = vadd.f32 1.0, %v2295_v7 }
 0x127   : > { %2914 = vst [vmem:[#allocation8_spill] sm:$0xff] %v2316_v35  ;;  %v2322_v45 = vpop.f32.mrb[15].mxu1  ;;  %v2326_v54 = vpop.eup %1798  ;;  %1812 = vlog2.f32 %v1190_v41  ;;  %v1194_v58 = vadd.f32 1.0, %v1193_v44  ;;  %v1196_v2 = vand.u32 2147483647, %v1793_v63  ;;  %v1031_v10 = vmul.f32 -0.5, %v2295_v7 }
 0x128   : > { %2915 = vst [vmem:[#allocation9_spill] sm:$0xff] %v2322_v45  ;;  %v1024_v49 = vmul.f32 %v1787_v39, %v1023_v20  ;;  %vm2329_vm5 = vcmp.lt.f32.partialorder %v1025_v9, 0.0004427343  ;;  %1814 = vlog2.f32 %v1028_v5  ;;  %v1172_v29 = vadd.f32 1.0, %v2318_v38 }
 0x129   : > { %v1168_v0 = vmul.f32 %v1789_v46, %v1167_v23  ;;  %vm2335_vm7 = vcmp.lt.f32.partialorder %v1169_v30, 0.0004427343  ;;  %vm2339_vm8 = vcmp.lt.f32.partialorder %v1052_v40, 0.0004427343  ;;  %v1175_v39 = vmul.f32 -0.5, %v2318_v38 }
 0x12a   : > { %v1801_v33 = vpop.eup %1800  ;;  %v1051_v41 = vmul.f32 %v2277_v50, %v1050_v51  ;;  %1816 = vlog2.f32 %v1172_v29  ;;  %v1073_v44 = vadd.f32 1.0, %v2326_v54  ;;  %v1195_v30 = vmul.f32 %v1793_v63, %v1194_v58 }
 0x12b   : > { %v1803_v9 = vpop.eup %1802  ;;  %v1039_v20 = vmul.f32 0.6931472, %v1801_v33  ;;  %vm2347_vm10 = vcmp.lt.f32.partialorder %v1196_v2, 0.0004427343  ;;  %v1032_v40 = vadd.f32 1.0, %v1031_v10  ;;  %v1076_v50 = vmul.f32 -0.5, %v2326_v54 }
 0x12c   : > { %v1805_v46 = vpop.eup %1804  ;;  %v1183_v23 = vmul.f32 0.6931472, %v1803_v9  ;;  %v1034_v45 = vand.u32 2147483647, %v2295_v7  ;;  %1818 = vlog2.f32 %v1073_v44  ;;  %v1176_v2 = vadd.f32 1.0, %v1175_v39 }
 0x12d   : > { %v2352_v14 = vpop.eup %1806  ;;  %v1045_v33 = vsel %vm2297_vm0, %v1042_v47, %v1039_v20  ;;  %v1021_v12 = vmul.f32 0.6931472, %v1805_v46  ;;  %v1178_v8 = vand.u32 2147483647, %v2318_v38  ;;  %v1079_v39 = vand.u32 2147483647, %v2326_v54 }
 0x12e   : > { %v1809_v51 = vpop.eup %1808  ;;  %v1309_v63 = vsel %vm893_vm1, %v2200_v36, %v1045_v33  ;;  %v1189_v58 = vsel %vm2308_vm2, %v1186_v48, %v1183_v23  ;;  %v1077_v48 = vadd.f32 1.0, %v1076_v50  ;;  %v1033_v46 = vmul.f32 %v2295_v7, %v1032_v40 }
 0x12f   : > { %1820 = vtanh.f32 %v1309_v63  ;;  %v1325_v47 = vsel %vm909_vm3, %v2203_v37, %v1189_v58  ;;  %v1027_v10 = vsel %vm2329_vm5, %v1024_v49, %v1021_v12  ;;  %v1165_v29 = vmul.f32 0.6931472, %v1809_v51  ;;  %v1811_v9 = vpop.eup %1810 }
 0x130   : > { %1822 = vtanh.f32 %v1325_v47  ;;  %v1307_v16 = vsel %vm891_vm4, %v2208_v42, %v1027_v10  ;;  %v1048_v44 = vmul.f32 0.6931472, %v1811_v9  ;;  %v1217_v49 = vadd.f32 1.0, %v2352_v14 }
 0x131   : > { %1824 = vtanh.f32 %v1307_v16  ;;  %v1171_v20 = vsel %vm2335_vm7, %v1168_v0, %v1165_v29  ;;  %v1813_v12 = vpop.eup %1812  ;;  %vm2382_vm14 = vcmp.lt.f32.partialorder %v1034_v45, 0.0004427343  ;;  %vm2386_vm15 = vcmp.lt.f32.partialorder %v1178_v8, 0.0004427343 }
 0x132   : > { %v1323_v35 = vsel %vm907_vm6, %v2211_v43, %v1171_v20  ;;  %vm897_vm0 = vcmp.gt.f32.partialorder %v2243_v13, 20.0  ;;  %v1815_v0 = vpop.eup %1814  ;;  %v1054_v1 = vsel %vm2339_vm8, %v1051_v41, %v1048_v44  ;;  %v1192_v50 = vmul.f32 0.6931472, %v1813_v12 }
 0x133   : > { %1826 = vtanh.f32 %v1323_v35  ;;  %v1177_v7 = vmul.f32 %v2318_v38, %v1176_v2  ;;  %v1310_v45 = vsel %vm894_vm9, %v2220_v52, %v1054_v1  ;;  %v1030_v40 = vmul.f32 0.6931472, %v1815_v0 }
 0x134   : > { %vm2398_vm1 = vcmp.lt.f32.partialorder %v1079_v39, 0.0004427343  ;;  %1828 = vlog2.f32 %v1217_v49  ;;  %v1817_v63 = vpop.eup %1816  ;;  %v1198_v58 = vsel %vm2347_vm10, %v1195_v30, %v1192_v50  ;;  %v1078_v11 = vmul.f32 %v2326_v54, %v1077_v48 }
 0x135   : > { %1830 = vtanh.f32 %v1310_v45  ;;  %v1220_v41 = vmul.f32 -0.5, %v2352_v14  ;;  %v1326_v38 = vsel %vm910_vm11, %v2223_v53, %v1198_v58  ;;  %v1036_v2 = vsel %vm2382_vm14, %v1033_v46, %v1030_v40 }
 0x136   : > { %v1174_v8 = vmul.f32 0.6931472, %v1817_v63  ;;  %v1223_v47 = vand.u32 2147483647, %v2352_v14  ;;  %v1819_v10 = vpop.eup %1818  ;;  %1832 = vtanh.f32 %v1326_v38  ;;  %v1308_v54 = vsel %vm892_vm12, %v2226_v56, %v1036_v2 }
 0x137   : > { %v2930_v30 = vmin.f32 %v2263_v25, 20.0  ;;  %v930_v29 = vmin.f32 %v2280_v55, 20.0  ;;  %1834 = vtanh.f32 %v1308_v54  ;;  %v1075_v16 = vmul.f32 0.6931472, %v1819_v10 }
 0x138   : > { %v1180_v9 = vsel %vm2386_vm15, %v1177_v7, %v1174_v8  ;;  %v946_v48 = vmin.f32 %v2285_v60, 20.0  ;;  %1836 = vpow2.f32 %v2282_v59  ;;  %v2429_v49 = vadd.f32 %v2193_v26, %v2314_v34 }
 0x139   : > { %v995_v5 = vmul.f32 1.442695, %v2930_v30  ;;  %v1821_v39 = vpop.eup %1820  ;;  %v1324_v20 = vsel %vm908_vm13, %v2229_v57, %v1180_v9  ;;  %v969_v44 = vmul.f32 1.442695, %v930_v29  ;;  %v1081_v46 = vsel %vm2398_vm1, %v1078_v11, %v1075_v16 }
 0x13a   : > { %v1823_v12 = vpop.eup %1822  ;;  %v1373_v35 = vmul.f32 %v1821_v39, %v2200_v36  ;;  %1838 = vtanh.f32 %v1324_v20  ;;  %v1001_v23 = vmul.f32 1.442695, %v946_v48  ;;  %v1313_v59 = vsel %vm897_vm0, %v2243_v13, %v1081_v46 }
 0x13b   : > { %v1825_v33 = vpop.eup %1824  ;;  %v1389_v0 = vmul.f32 %v1823_v12, %v2203_v37  ;;  %v1221_v1 = vadd.f32 1.0, %v1220_v41  ;;  %1840 = vpow2.f32 %v995_v5  ;;  %v928_v34 = vmin.f32 %v2429_v49, 20.0 }
 0x13c   : > { %1405 = vst [vmem:[%s2438_s14 + $0x10] sm:$0xff] %v1373_v35  ;;  %v1371_v36 = vmul.f32 %v1825_v33, %v2208_v42  ;;  %1842 = vtanh.f32 %v1313_v59  ;;  %v841_v37 = vmul.f32 %v2188_v24, %v2237_v6  ;;  %v830_v7 = vmul.f32 %v2253_v18, %v2188_v24 }
 0x13d   : > { %v1827_v50 = vpop.eup %1826  ;;  %1421 = vst [vmem:[%s2438_s14 + $0x90] sm:$0xff] %v1389_v0  ;;  %1844 = vpow2.f32 %v969_v44  ;;  %v846_v45 = vmul.f32 %v2255_v19, %v2188_v24  ;;  %v965_v51 = vmul.f32 1.442695, %v928_v34  ;;  %v1222_v11 = vmul.f32 %v2352_v14, %v1221_v1 }
 0x13e   : > { %v1829_v40 = vpop.eup %1828  ;;  %1403 = vst [vmem:[%s2438_s14] sm:$0xff] %v1371_v36  ;;  %v1387_v42 = vmul.f32 %v1827_v50, %v2211_v43  ;;  %1846 = vpow2.f32 %v1001_v23  ;;  %v2453_v63 = vadd.f32 %v2193_v26, %v841_v37  ;;  %v2457_v41 = vadd.f32 %v2193_v26, %v830_v7 }
 0x13f   : > { %v1831_v6 = vpop.eup %1830  ;;  %v1219_v58 = vmul.f32 0.6931472, %v1829_v40  ;;  %v2460_v18 = vadd.f32 %v2193_v26, %v846_v45  ;;  %vm1224_vm2 = vcmp.lt.f32.partialorder %v1223_v47, 0.0004427343  ;;  %1848 = vpow2.f32 %v965_v51 }
 0x140   : > { %1419 = vst [vmem:[%s2438_s14 + $0x80] sm:$0xff] %v1387_v42  ;;  %v1374_v19 = vmul.f32 %v1831_v6, %v2220_v52  ;;  %v944_v43 = vmin.f32 %v2453_v63, 20.0  ;;  %v1833_v38 = vpop.eup %1832  ;;  %vm913_vm3 = vcmp.gt.f32.partialorder %v2247_v15, 20.0  ;;  %v933_v14 = vmin.f32 %v2457_v41, 20.0 }
 0x141   : > { %v1225_v2 = vsel %vm1224_vm2, %v1222_v11, %v1219_v58  ;;  %v1835_v8 = vpop.eup %1834  ;;  %v1390_v10 = vmul.f32 %v1833_v38, %v2223_v53  ;;  %v949_v52 = vmin.f32 %v2460_v18, 20.0  ;;  %v828_v9 = vmul.f32 %v2188_v24, %v2258_v21 }
 0x142   : > { %1406 = vst [vmem:[%s2438_s14 + $0x18] sm:$0xff] %v1374_v19  ;;  %v1329_v54 = vsel %vm913_vm3, %v2247_v15, %v1225_v2  ;;  %v997_v30 = vmul.f32 1.442695, %v944_v43  ;;  %v1837_v47 = vpop.eup %1836  ;;  %v1372_v5 = vmul.f32 %v1835_v8, %v2226_v56  ;;  %v975_v29 = vmul.f32 1.442695, %v933_v14 }
 0x143   : > { %1850 = vtanh.f32 %v1329_v54  ;;  %1422 = vst [vmem:[%s2438_s14 + $0x98] sm:$0xff] %v1390_v10  ;;  %v1055_v48 = vadd.f32 1.0, %v1837_v47  ;;  %v1058_v20 = vmul.f32 -0.5, %v1837_v47  ;;  %v1007_v44 = vmul.f32 1.442695, %v949_v52 }
 0x144   : > { %v1839_v16 = vpop.eup %1838  ;;  %1852 = vpow2.f32 %v997_v30  ;;  %1404 = vst [vmem:[%s2438_s14 + $0x8] sm:$0xff] %v1372_v5  ;;  %v2480_v23 = vadd.f32 %v2193_v26, %v828_v9  ;;  %v1061_v0 = vand.u32 2147483647, %v1837_v47  ;;  %vm895_vm4 = vcmp.gt.f32.partialorder %v2251_v17, 20.0 }
 0x145   : > { %v1841_v39 = vpop.eup %1840  ;;  %v1388_v53 = vmul.f32 %v1839_v16, %v2229_v57  ;;  %1854 = vpow2.f32 %v975_v29  ;;  %v1059_v1 = vadd.f32 1.0, %v1058_v20  ;;  %vm911_vm6 = vcmp.gt.f32.partialorder %v2263_v25, 20.0 }
 0x146   : > { %v1843_v12 = vpop.eup %1842  ;;  %1856 = vlog2.f32 %v1055_v48  ;;  %v1199_v56 = vadd.f32 1.0, %v1841_v39  ;;  %v1202_v21 = vmul.f32 -0.5, %v1841_v39  ;;  %v1205_v34 = vand.u32 2147483647, %v1841_v39 }
 0x147   : > { %v1845_v35 = vpop.eup %1844  ;;  %1420 = vst [vmem:[%s2438_s14 + $0x88] sm:$0xff] %v1388_v53  ;;  %v1377_v46 = vmul.f32 %v1843_v12, %v2243_v13  ;;  %1858 = vpow2.f32 %v1007_v44  ;;  %vm2484_vm5 = vcmp.lt.f32.partialorder %v1061_v0, 0.0004427343  ;;  %v931_v58 = vmin.f32 %v2480_v23, 20.0 }
 0x148   : > { %v1847_v33 = vpop.eup %1846  ;;  %1860 = vlog2.f32 %v1199_v56  ;;  %v1082_v57 = vadd.f32 1.0, %v1845_v35  ;;  %v1085_v59 = vmul.f32 -0.5, %v1845_v35  ;;  %v1203_v36 = vadd.f32 1.0, %v1202_v21 }
 0x149   : > { %1409 = vst [vmem:[%s2438_s14 + $0x30] sm:$0xff] %v1377_v46  ;;  %v1226_v37 = vadd.f32 1.0, %v1847_v33  ;;  %v1849_v50 = vpop.eup %1848  ;;  %v1088_v45 = vand.u32 2147483647, %v1845_v35  ;;  %v1229_v13 = vmul.f32 -0.5, %v1847_v33  ;;  %v1060_v19 = vmul.f32 %v1837_v47, %v1059_v1 }
 0x14a   : > { %1862 = vlog2.f32 %v1082_v57  ;;  %v1086_v7 = vadd.f32 1.0, %v1085_v59  ;;  %v1232_v40 = vand.u32 2147483647, %v1847_v33  ;;  %v1064_v42 = vadd.f32 1.0, %v1849_v50 }
 0x14b   : > { %1864 = vlog2.f32 %v1226_v37  ;;  %v1067_v6 = vmul.f32 -0.5, %v1849_v50  ;;  %v1204_v43 = vmul.f32 %v1841_v39, %v1203_v36  ;;  %vm2490_vm7 = vcmp.lt.f32.partialorder %v1205_v34, 0.0004427343 }
 0x14c   : > { %1866 = vlog2.f32 %v1064_v42  ;;  %v1087_v8 = vmul.f32 %v1845_v35, %v1086_v7  ;;  %vm2495_vm8 = vcmp.lt.f32.partialorder %v1088_v45, 0.0004427343  ;;  %v1230_v54 = vadd.f32 1.0, %v1229_v13 }
 0x14d   : > { %v1851_v11 = vpop.eup %1850  ;;  %vm898_vm9 = vcmp.gt.f32.partialorder %v2280_v55, 20.0  ;;  %vm2502_vm10 = vcmp.lt.f32.partialorder %v1232_v40, 0.0004427343  ;;  %v1070_v47 = vand.u32 2147483647, %v1849_v50  ;;  %vm914_vm11 = vcmp.gt.f32.partialorder %v2285_v60, 20.0 }
 0x14e   : > { %v1853_v2 = vpop.eup %1852  ;;  %v1393_v14 = vmul.f32 %v1851_v11, %v2247_v15  ;;  %v1068_v15 = vadd.f32 1.0, %v1067_v6  ;;  %v971_v48 = vmul.f32 1.442695, %v931_v58  ;;  %v844_v39 = vmul.f32 %v2188_v24, %v2260_v22 }
 0x14f   : > { %v2499_v30 = vpop.eup %1854  ;;  %v1208_v5 = vadd.f32 1.0, %v1853_v2  ;;  %v1211_v29 = vmul.f32 -0.5, %v1853_v2  ;;  %v1214_v44 = vand.u32 2147483647, %v1853_v2  ;;  %v1231_v35 = vmul.f32 %v1847_v33, %v1230_v54 }
 0x150   : > { %v1857_v9 = vpop.eup %1856  ;;  %1425 = vst [vmem:[%s2438_s14 + $0xb0] sm:$0xff] %v1393_v14  ;;  %v1109_v16 = vadd.f32 1.0, %v2499_v30  ;;  %v1112_v12 = vmul.f32 -0.5, %v2499_v30  ;;  %vm896_vm12 = vcmp.gt.f32.partialorder %v2429_v49, 20.0  ;;  %v1115_v46 = vand.u32 2147483647, %v2499_v30 }
 0x151   : > { %v2511_v53 = vpop.eup %1858  ;;  %v1057_v20 = vmul.f32 0.6931472, %v1857_v9  ;;  %1868 = vlog2.f32 %v1208_v5  ;;  %v1212_v57 = vadd.f32 1.0, %v1211_v29  ;;  %v831_v59 = vmul.f32 %v2265_v27, %v2188_v24 }
 0x152   : > { %v1861_v56 = vpop.eup %1860  ;;  %1870 = vlog2.f32 %v1109_v16  ;;  %v1253_v21 = vadd.f32 1.0, %v2511_v53  ;;  %v1069_v36 = vmul.f32 %v1849_v50, %v1068_v15  ;;  %vm2524_vm13 = vcmp.lt.f32.partialorder %v1070_v47, 0.0004427343 }
 0x153   : > { %v1063_v0 = vsel %vm2484_vm5, %v1060_v19, %v1057_v20  ;;  %v1201_v22 = vmul.f32 0.6931472, %v1861_v56  ;;  %vm2530_vm14 = vcmp.lt.f32.partialorder %v1214_v44, 0.0004427343  ;;  %v1113_v27 = vadd.f32 1.0, %v1112_v12 }
 0x154   : > { %v1863_v1 = vpop.eup %1862  ;;  %v1311_v33 = vsel %vm895_vm4, %v2251_v17, %v1063_v0  ;;  %1872 = vlog2.f32 %v1253_v21  ;;  %vm912_vm15 = vcmp.gt.f32.partialorder %v2453_v63, 20.0  ;;  %vm2538_vm0 = vcmp.lt.f32.partialorder %v1115_v46, 0.0004427343 }
 0x155   : > { %v1865_v37 = vpop.eup %1864  ;;  %1874 = vtanh.f32 %v1311_v33  ;;  %v1207_v7 = vsel %vm2490_vm7, %v1204_v43, %v1201_v22  ;;  %v1084_v45 = vmul.f32 0.6931472, %v1863_v1  ;;  %v1256_v51 = vmul.f32 -0.5, %v2511_v53 }
 0x156   : > { %v1327_v50 = vsel %vm911_vm6, %v2263_v25, %v1207_v7  ;;  %v1228_v40 = vmul.f32 0.6931472, %v1865_v37  ;;  %1876 = vpow2.f32 %v971_v48  ;;  %v1867_v6 = vpop.eup %1866  ;;  %v1213_v11 = vmul.f32 %v1853_v2, %v1212_v57 }
 0x157   : > { %1878 = vtanh.f32 %v1327_v50  ;;  %v1090_v58 = vsel %vm2495_vm8, %v1087_v8, %v1084_v45  ;;  %vm901_vm1 = vcmp.gt.f32.partialorder %v2457_v41, 20.0  ;;  %v2547_v19 = vadd.f32 %v2193_v26, %v844_v39 }
 0x158   : > { %v1314_v43 = vsel %vm898_vm9, %v2280_v55, %v1090_v58  ;;  %v1234_v38 = vsel %vm2502_vm10, %v1231_v35, %v1228_v40  ;;  %v1066_v14 = vmul.f32 0.6931472, %v1867_v6  ;;  %v2555_v54 = vadd.f32 %v2193_v26, %v831_v59 }
 0x159   : > { %1880 = vtanh.f32 %v1314_v43  ;;  %v1330_v2 = vsel %vm914_vm11, %v2285_v60, %v1234_v38  ;;  %vm917_vm2 = vcmp.gt.f32.partialorder %v2460_v18, 20.0  ;;  %v1259_v8 = vand.u32 2147483647, %v2511_v53 }
 0x15a   : > { %v947_v10 = vmin.f32 %v2547_v19, 20.0  ;;  %1882 = vtanh.f32 %v1330_v2  ;;  %v1072_v52 = vsel %vm2524_vm13, %v1069_v36, %v1066_v14  ;;  %v1257_v47 = vadd.f32 1.0, %v1256_v51 }
 0x15b   : > { %v934_v5 = vmin.f32 %v2555_v54, 20.0  ;;  %v1869_v29 = vpop.eup %1868  ;;  %v1312_v9 = vsel %vm896_vm12, %v2429_v49, %v1072_v52  ;;  %v847_v16 = vmul.f32 %v2267_v28, %v2188_v24  ;;  %v829_v48 = vmul.f32 %v2188_v24, %v2270_v31 }
 0x15c   : > { %v1003_v15 = vmul.f32 1.442695, %v947_v10  ;;  %v1871_v39 = vpop.eup %1870  ;;  %1884 = vtanh.f32 %v1312_v9  ;;  %v1210_v20 = vmul.f32 0.6931472, %v1869_v29  ;;  %v1114_v44 = vmul.f32 %v2499_v30, %v1113_v27 }
 0x15d   : > { %v977_v12 = vmul.f32 1.442695, %v934_v5  ;;  %v1111_v56 = vmul.f32 0.6931472, %v1871_v39  ;;  %v2575_v35 = vadd.f32 %v2193_v26, %v847_v16  ;;  %v845_v46 = vmul.f32 %v2188_v24, %v2272_v32 }
 0x15e   : > { %1886 = vpow2.f32 %v1003_v15  ;;  %v1873_v21 = vpop.eup %1872  ;;  %v1216_v28 = vsel %vm2530_vm14, %v1213_v11, %v1210_v20  ;;  %v1258_v31 = vmul.f32 %v2511_v53, %v1257_v47  ;;  %vm2582_vm3 = vcmp.lt.f32.partialorder %v1259_v8, 0.0004427343 }
 0x15f   : > { %1888 = vpow2.f32 %v977_v12  ;;  %v1875_v30 = vpop.eup %1874  ;;  %v1328_v22 = vsel %vm912_vm15, %v2453_v63, %v1216_v28  ;;  %v1117_v32 = vsel %vm2538_vm0, %v1114_v44, %v1111_v56  ;;  %v1255_v57 = vmul.f32 0.6931472, %v1873_v21 }
 0x160   : > { %v2592_v59 = vadd.f32 %v2193_v26, %v829_v48  ;;  %v2594_v1 = vpop.eup %1876  ;;  %v1375_v53 = vmul.f32 %v1875_v30, %v2251_v17  ;;  %1890 = vtanh.f32 %v1328_v22  ;;  %v1317_v33 = vsel %vm901_vm1, %v2457_v41, %v1117_v32  ;;  %v2947_v30 = vld [vmem:[#allocation6_spill] sm:$0xff] }
 0x161   : > { %v950_v36 = vmin.f32 %v2575_v35, 20.0  ;;  %v1879_v34 = vpop.eup %1878  ;;  %1892 = vtanh.f32 %v1317_v33  ;;  %v1261_v37 = vsel %vm2582_vm3, %v1258_v31, %v1255_v57  ;;  %v1091_v7 = vadd.f32 1.0, %v2594_v1 }
 0x162   : > { %v2605_v45 = vadd.f32 %v2193_v26, %v845_v46  ;;  %1407 = vst [vmem:[%s2438_s14 + $0x20] sm:$0xff] %v1375_v53  ;;  %v1391_v17 = vmul.f32 %v1879_v34, %v2263_v25  ;;  %v1333_v13 = vsel %vm917_vm2, %v2460_v18, %v1261_v37  ;;  %v834_v50 = vmul.f32 %v2287_v61, %v2188_v24 }
 0x163   : > { %v1009_v27 = vmul.f32 1.442695, %v950_v36  ;;  %v1881_v40 = vpop.eup %1880  ;;  %1894 = vtanh.f32 %v1333_v13  ;;  %v932_v42 = vmin.f32 %v2592_v59, 20.0  ;;  %v1094_v43 = vmul.f32 -0.5, %v2594_v1 }
 0x164   : > { %v1883_v51 = vpop.eup %1882  ;;  %1423 = vst [vmem:[%s2438_s14 + $0xa0] sm:$0xff] %v1391_v17  ;;  %v1378_v6 = vmul.f32 %v1881_v40, %v2280_v55  ;;  %1896 = vlog2.f32 %v1091_v7  ;;  %v948_v61 = vmin.f32 %v2605_v45, 20.0  ;;  %v2622_v38 = vadd.f32 %v2193_v26, %v834_v50 }
 0x165   : > { %v1394_v25 = vmul.f32 %v1883_v51, %v2285_v60  ;;  %1898 = vpow2.f32 %v1009_v27  ;;  %v973_v58 = vmul.f32 1.442695, %v932_v42  ;;  %v850_v52 = vmul.f32 %v2289_v62, %v2188_v24 }
 0x166   : > { %v1885_v11 = vpop.eup %1884  ;;  %1410 = vst [vmem:[%s2438_s14 + $0x38] sm:$0xff] %v1378_v6  ;;  %v1005_v8 = vmul.f32 1.442695, %v948_v61  ;;  %v832_v47 = vmul.f32 %v2188_v24, %v2291_v3  ;;  %v848_v5 = vmul.f32 %v2188_v24, %v2293_v4  ;;  %v1095_v29 = vadd.f32 1.0, %v1094_v43  ;;  %v2696_v61 = vld [vmem:[%s2903_s2] ss:$0 sm:$0xff] }
 0x167   : > { %1426 = vst [vmem:[%s2438_s14 + $0xb8] sm:$0xff] %v1394_v25  ;;  %v1376_v55 = vmul.f32 %v1885_v11, %v2429_v49  ;;  %1900 = vpow2.f32 %v973_v58  ;;  %v937_v9 = vmin.f32 %v2622_v38, 20.0  ;;  %vm899_vm4 = vcmp.gt.f32.partialorder %v2480_v23, 20.0 }
 0x168   : > { %v2624_v14 = vpop.eup %1886  ;;  %v1097_v48 = vand.u32 2147483647, %v2594_v1  ;;  %v2647_v20 = vadd.f32 %v2193_v26, %v850_v52  ;;  %v2650_v44 = vadd.f32 %v2193_v26, %v832_v47  ;;  %v1096_v56 = vmul.f32 %v2594_v1, %v1095_v29 }
 0x169   : > { %v2628_v2 = vpop.eup %1888  ;;  %v1235_v60 = vadd.f32 1.0, %v2624_v14  ;;  %1408 = vst [vmem:[%s2438_s14 + $0x28] sm:$0xff] %v1376_v55  ;;  %v983_v3 = vmul.f32 1.442695, %v937_v9  ;;  %v1238_v4 = vmul.f32 -0.5, %v2624_v14  ;;  %v835_v22 = vmul.f32 %v2947_v30, %v2188_v24  ;;  %v2952_v55 = vld [vmem:[#allocation7_spill] sm:$0xff] }
 0x16a   : > { %v1118_v10 = vadd.f32 1.0, %v2628_v2  ;;  %v1891_v49 = vpop.eup %1890  ;;  %v1121_v46 = vmul.f32 -0.5, %v2628_v2  ;;  %v1241_v31 = vand.u32 2147483647, %v2624_v14  ;;  %v953_v0 = vmin.f32 %v2647_v20, 20.0 }
 0x16b   : > { %1902 = vlog2.f32 %v1235_v60  ;;  %v1893_v15 = vpop.eup %1892  ;;  %v1392_v16 = vmul.f32 %v1891_v49, %v2453_v63  ;;  %v2653_v63 = vadd.f32 %v2193_v26, %v848_v5  ;;  %vm1098_vm5 = vcmp.lt.f32.partialorder %v1097_v48, 0.0004427343 }
 0x16c   : > { %1904 = vlog2.f32 %v1118_v10  ;;  %v1381_v62 = vmul.f32 %v1893_v15, %v2457_v41  ;;  %v1124_v32 = vand.u32 2147483647, %v2628_v2  ;;  %v935_v57 = vmin.f32 %v2650_v44, 20.0 }
 0x16d   : > { %1906 = vpow2.f32 %v1005_v8  ;;  %v1895_v39 = vpop.eup %1894  ;;  %1424 = vst [vmem:[%s2438_s14 + $0xa8] sm:$0xff] %v1392_v16  ;;  %v1239_v33 = vadd.f32 1.0, %v1238_v4  ;;  %v1015_v36 = vmul.f32 1.442695, %v953_v0  ;;  %v951_v34 = vmin.f32 %v2653_v63, 20.0 }
 0x16e   : > { %v1897_v12 = vpop.eup %1896  ;;  %1413 = vst [vmem:[%s2438_s14 + $0x50] sm:$0xff] %v1381_v62  ;;  %v1397_v41 = vmul.f32 %v1895_v39, %v2460_v18  ;;  %1908 = vpow2.f32 %v983_v3  ;;  %vm915_vm6 = vcmp.gt.f32.partialorder %v2547_v19, 20.0  ;;  %v1122_v24 = vadd.f32 1.0, %v1121_v46  ;;  %v2720_v3 = vld [vmem:[%s2904_s3] ss:$0 sm:$0xff] }
 0x16f   : > { %v2659_v21 = vpop.eup %1898  ;;  %v1093_v28 = vmul.f32 0.6931472, %v1897_v12  ;;  %vm2676_vm7 = vcmp.lt.f32.partialorder %v1241_v31, 0.0004427343  ;;  %v2682_v13 = vadd.f32 %v2193_v26, %v835_v22  ;;  %vm2684_vm8 = vcmp.lt.f32.partialorder %v1124_v32, 0.0004427343 }
 0x170   : > { %1429 = vst [vmem:[%s2438_s14 + $0xd0] sm:$0xff] %v1397_v41  ;;  %v1262_v18 = vadd.f32 1.0, %v2659_v21  ;;  %v979_v40 = vmul.f32 1.442695, %v935_v57  ;;  %v1011_v42 = vmul.f32 1.442695, %v951_v34  ;;  %v1240_v25 = vmul.f32 %v2624_v14, %v1239_v33 }
 0x171   : > { %v2669_v1 = vpop.eup %1900  ;;  %v1099_v53 = vsel %vm1098_vm5, %v1096_v56, %v1093_v28  ;;  %v1265_v58 = vmul.f32 -0.5, %v2659_v21  ;;  %v1123_v26 = vmul.f32 %v2628_v2, %v1122_v24  ;;  %v851_v60 = vmul.f32 %v2696_v61, %v2952_v55  ;;  %v2953_v22 = vld [vmem:[#allocation8_spill] sm:$0xff] }
 0x172   : > { %v1315_v37 = vsel %vm899_vm4, %v2480_v23, %v1099_v53  ;;  %1910 = vlog2.f32 %v1262_v18  ;;  %v1100_v17 = vadd.f32 1.0, %v2669_v1  ;;  %v1103_v8 = vmul.f32 -0.5, %v2669_v1 }
 0x173   : > { %1912 = vtanh.f32 %v1315_v37  ;;  %v938_v52 = vmin.f32 %v2682_v13, 20.0  ;;  %vm902_vm9 = vcmp.gt.f32.partialorder %v2555_v54, 20.0  ;;  %v1266_v29 = vadd.f32 1.0, %v1265_v58  ;;  %v2956_v58 = vld [vmem:[#allocation9_spill] sm:$0xff] }
 0x174   : > { %1914 = vpow2.f32 %v1015_v36  ;;  %v1268_v15 = vand.u32 2147483647, %v2659_v21  ;;  %v1106_v16 = vand.u32 2147483647, %v2669_v1  ;;  %v1104_v62 = vadd.f32 1.0, %v1103_v8 }
 0x175   : > { %v1903_v27 = vpop.eup %1902  ;;  %1916 = vlog2.f32 %v1100_v17  ;;  %v985_v48 = vmul.f32 1.442695, %v938_v52  ;;  %v2723_v39 = vadd.f32 %v2720_v3, %v851_v60  ;;  %vm918_vm10 = vcmp.gt.f32.partialorder %v2575_v35, 20.0 }
 0x176   : > { %v1905_v51 = vpop.eup %1904  ;;  %v1237_v6 = vmul.f32 0.6931472, %v1903_v27  ;;  %1918 = vpow2.f32 %v979_v40  ;;  %vm900_vm11 = vcmp.gt.f32.partialorder %v2592_v59, 20.0  ;;  %v1267_v46 = vmul.f32 %v2659_v21, %v1266_v29 }
 0x177   : > { %v2690_v11 = vpop.eup %1906  ;;  %v1120_v43 = vmul.f32 0.6931472, %v1905_v51  ;;  %1920 = vpow2.f32 %v1011_v42  ;;  %vm1269_vm12 = vcmp.lt.f32.partialorder %v1268_v15, 0.0004427343  ;;  %v954_v30 = vmin.f32 %v2723_v39, 20.0 }
 0x178   : > { %v1243_v14 = vsel %vm2676_vm7, %v1240_v25, %v1237_v6  ;;  %v1244_v10 = vadd.f32 1.0, %v2690_v11  ;;  %v2705_v47 = vpop.eup %1908  ;;  %v1247_v12 = vmul.f32 -0.5, %v2690_v11  ;;  %v833_v32 = vmul.f32 %v2696_v61, %v2953_v22 }
 0x179   : > { %v1331_v2 = vsel %vm915_vm6, %v2547_v19, %v1243_v14  ;;  %v1126_v5 = vsel %vm2684_vm8, %v1123_v26, %v1120_v43  ;;  %v1145_v9 = vadd.f32 1.0, %v2705_v47  ;;  %v1148_v28 = vmul.f32 -0.5, %v2705_v47 }
 0x17a   : > { %1922 = vtanh.f32 %v1331_v2  ;;  %v1318_v49 = vsel %vm902_vm9, %v2555_v54, %v1126_v5  ;;  %v1105_v53 = vmul.f32 %v2669_v1, %v1104_v62  ;;  %vm2737_vm13 = vcmp.lt.f32.partialorder %v1106_v16, 0.0004427343 }
 0x17b   : > { %1924 = vtanh.f32 %v1318_v49  ;;  %vm916_vm14 = vcmp.gt.f32.partialorder %v2605_v45, 20.0  ;;  %v1248_v37 = vadd.f32 1.0, %v1247_v12  ;;  %v1250_v24 = vand.u32 2147483647, %v2690_v11 }
 0x17c   : > { %1926 = vlog2.f32 %v1244_v10  ;;  %v1911_v4 = vpop.eup %1910  ;;  %v1149_v1 = vadd.f32 1.0, %v1148_v28  ;;  %v1151_v7 = vand.u32 2147483647, %v2705_v47  ;;  %v1017_v40 = vmul.f32 1.442695, %v954_v30 }
 0x17d   : > { %1928 = vlog2.f32 %v1145_v9  ;;  %v1913_v41 = vpop.eup %1912  ;;  %v1264_v56 = vmul.f32 0.6931472, %v1911_v4  ;;  %v2757_v42 = vadd.f32 %v2720_v3, %v833_v32  ;;  %v849_v43 = vmul.f32 %v2696_v61, %v2956_v58 }
 0x17e   : > { %1930 = vpow2.f32 %v985_v48  ;;  %v2730_v31 = vpop.eup %1914  ;;  %v1379_v0 = vmul.f32 %v1913_v41, %v2480_v23  ;;  %vm905_vm15 = vcmp.gt.f32.partialorder %v2622_v38, 20.0  ;;  %v1249_v10 = vmul.f32 %v2690_v11, %v1248_v37 }
 0x17f   : > { %v1917_v18 = vpop.eup %1916  ;;  %v1270_v57 = vsel %vm1269_vm12, %v1267_v46, %v1264_v56  ;;  %v1289_v21 = vadd.f32 1.0, %v2730_v31  ;;  %v1292_v60 = vmul.f32 -0.5, %v2730_v31  ;;  %vm2770_vm0 = vcmp.lt.f32.partialorder %v1250_v24, 0.0004427343 }
 0x180   : > { %v2742_v36 = vpop.eup %1918  ;;  %1411 = vst [vmem:[%s2438_s14 + $0x40] sm:$0xff] %v1379_v0  ;;  %v1334_v23 = vsel %vm918_vm10, %v2575_v35, %v1270_v57  ;;  %v1102_v34 = vmul.f32 0.6931472, %v1917_v18  ;;  %v936_v5 = vmin.f32 %v2757_v42, 20.0  ;;  %vm1152_vm1 = vcmp.lt.f32.partialorder %v1151_v7, 0.0004427343 }
 0x181   : > { %1932 = vtanh.f32 %v1334_v23  ;;  %v1127_v17 = vadd.f32 1.0, %v2742_v36  ;;  %v2752_v27 = vpop.eup %1920  ;;  %v2782_v11 = vadd.f32 %v2720_v3, %v849_v43  ;;  %v1293_v15 = vadd.f32 1.0, %v1292_v60 }
 0x182   : > { %v1108_v50 = vsel %vm2737_vm13, %v1105_v53, %v1102_v34  ;;  %1934 = vlog2.f32 %v1289_v21  ;;  %v1271_v25 = vadd.f32 1.0, %v2752_v27  ;;  %v1274_v16 = vmul.f32 -0.5, %v2752_v27 }
 0x183   : > { %v1316_v6 = vsel %vm900_vm11, %v2592_v59, %v1108_v50  ;;  %1936 = vlog2.f32 %v1127_v17  ;;  %v1295_v12 = vand.u32 2147483647, %v2730_v31  ;;  %v1133_v56 = vand.u32 2147483647, %v2742_v36 }
 0x184   : > { %v1923_v51 = vpop.eup %1922  ;;  %1938 = vtanh.f32 %v1316_v6  ;;  %vm921_vm2 = vcmp.gt.f32.partialorder %v2647_v20, 20.0  ;;  %vm903_vm3 = vcmp.gt.f32.partialorder %v2650_v44, 20.0  ;;  %v952_v28 = vmin.f32 %v2782_v11, 20.0 }
 0x185   : > { %v1925_v26 = vpop.eup %1924  ;;  %v1395_v55 = vmul.f32 %v1923_v51, %v2547_v19  ;;  %1940 = vlog2.f32 %v1271_v25  ;;  %v1130_v19 = vmul.f32 -0.5, %v2742_v36  ;;  %v1294_v22 = vmul.f32 %v2730_v31, %v1293_v15 }
 0x186   : > { %v1927_v14 = vpop.eup %1926  ;;  %v1382_v8 = vmul.f32 %v1925_v26, %v2555_v54  ;;  %1942 = vpow2.f32 %v1017_v40  ;;  %v1150_v54 = vmul.f32 %v2705_v47, %v1149_v1  ;;  %v981_v47 = vmul.f32 1.442695, %v936_v5 }
 0x187   : > { %v1929_v61 = vpop.eup %1928  ;;  %1427 = vst [vmem:[%s2438_s14 + $0xc0] sm:$0xff] %v1395_v55  ;;  %v1246_v2 = vmul.f32 0.6931472, %v1927_v14  ;;  %v1131_v41 = vadd.f32 1.0, %v1130_v19  ;;  %v1275_v32 = vadd.f32 1.0, %v1274_v16  ;;  %vm919_vm7 = vcmp.gt.f32.partialorder %v2653_v63, 20.0 }
 0x188   : > { %v2777_v49 = vpop.eup %1930  ;;  %1414 = vst [vmem:[%s2438_s14 + $0x58] sm:$0xff] %v1382_v8  ;;  %v1147_v29 = vmul.f32 0.6931472, %v1929_v61  ;;  %v1277_v53 = vand.u32 2147483647, %v2752_v27  ;;  %vm906_vm9 = vcmp.gt.f32.partialorder %v2682_v13, 20.0 }
 0x189   : > { %v1252_v9 = vsel %vm2770_vm0, %v1249_v10, %v1246_v2  ;;  %v1154_v62 = vadd.f32 1.0, %v2777_v49  ;;  %v1013_v33 = vmul.f32 1.442695, %v952_v28  ;;  %vm1296_vm4 = vcmp.lt.f32.partialorder %v1295_v12, 0.0004427343 }
 0x18a   : > { %v1332_v48 = vsel %vm916_vm14, %v2605_v45, %v1252_v9  ;;  %v1153_v4 = vsel %vm1152_vm1, %v1150_v54, %v1147_v29  ;;  %v1132_v34 = vmul.f32 %v2742_v36, %v1131_v41  ;;  %vm1134_vm5 = vcmp.lt.f32.partialorder %v1133_v56, 0.0004427343 }
 0x18b   : > { %1944 = vtanh.f32 %v1332_v48  ;;  %v1321_v3 = vsel %vm905_vm15, %v2622_v38, %v1153_v4  ;;  %v1933_v46 = vpop.eup %1932  ;;  %v1157_v24 = vmul.f32 -0.5, %v2777_v49  ;;  %v1276_v40 = vmul.f32 %v2752_v27, %v1275_v32 }
 0x18c   : > { %1946 = vtanh.f32 %v1321_v3  ;;  %v1935_v0 = vpop.eup %1934  ;;  %v1398_v30 = vmul.f32 %v1933_v46, %v2575_v35  ;;  %vm1278_vm6 = vcmp.lt.f32.partialorder %v1277_v53, 0.0004427343  ;;  %v1160_v27 = vand.u32 2147483647, %v2777_v49 }
 0x18d   : > { %1948 = vlog2.f32 %v1154_v62  ;;  %v1937_v18 = vpop.eup %1936  ;;  %v1291_v57 = vmul.f32 0.6931472, %v1935_v0  ;;  %v1158_v25 = vadd.f32 1.0, %v1157_v24  ;;  %vm922_vm11 = vcmp.gt.f32.partialorder %v2723_v39, 20.0 }
 0x18e   : > { %1950 = vpow2.f32 %v981_v47  ;;  %v1939_v21 = vpop.eup %1938  ;;  %1430 = vst [vmem:[%s2438_s14 + $0xd8] sm:$0xff] %v1398_v30  ;;  %v1129_v23 = vmul.f32 0.6931472, %v1937_v18  ;;  %vm1161_vm8 = vcmp.lt.f32.partialorder %v1160_v27, 0.0004427343  ;;  %vm904_vm13 = vcmp.gt.f32.partialorder %v2757_v42, 20.0 }
 0x18f   : > { %v1941_v37 = vpop.eup %1940  ;;  %v1380_v35 = vmul.f32 %v1939_v21, %v2592_v59  ;;  %v1297_v31 = vsel %vm1296_vm4, %v1294_v22, %v1291_v57  ;;  %1952 = vpow2.f32 %v1013_v33  ;;  %v1159_v52 = vmul.f32 %v2777_v49, %v1158_v25 }
 0x190   : > { %v1943_v1 = vpop.eup %1942  ;;  %v1337_v7 = vsel %vm921_vm2, %v2647_v20, %v1297_v31  ;;  %v1135_v17 = vsel %vm1134_vm5, %v1132_v34, %v1129_v23  ;;  %v1273_v50 = vmul.f32 0.6931472, %v1941_v37  ;;  %vm920_vm15 = vcmp.gt.f32.partialorder %v2782_v11, 20.0 }
 0x191   : > { %1412 = vst [vmem:[%s2438_s14 + $0x48] sm:$0xff] %v1380_v35  ;;  %1954 = vtanh.f32 %v1337_v7  ;;  %v1319_v36 = vsel %vm903_vm3, %v2650_v44, %v1135_v17  ;;  %v1298_v59 = vadd.f32 1.0, %v1943_v1  ;;  %v1301_v14 = vmul.f32 -0.5, %v1943_v1 }
 0x192   : > { %1956 = vtanh.f32 %v1319_v36  ;;  %v1279_v51 = vsel %vm1278_vm6, %v1276_v40, %v1273_v50  ;;  %v1304_v29 = vand.u32 2147483647, %v1943_v1 }
 0x193   : > { %v1335_v6 = vsel %vm919_vm7, %v2653_v63, %v1279_v51  ;;  %1958 = vlog2.f32 %v1298_v59 }
 0x194   : > { %1960 = vtanh.f32 %v1335_v6  ;;  %vm1305_vm10 = vcmp.lt.f32.partialorder %v1304_v29, 0.0004427343 }
 0x195   : > { %v1945_v58 = vpop.eup %1944 }
 0x196   : > { %v1947_v43 = vpop.eup %1946  ;;  %v1396_v26 = vmul.f32 %v1945_v58, %v2605_v45  ;;  %v1302_v45 = vadd.f32 1.0, %v1301_v14 }
 0x197   : > { %v1949_v55 = vpop.eup %1948  ;;  %v1385_v60 = vmul.f32 %v1947_v43, %v2622_v38 }
 0x198   : > { %v1951_v8 = vpop.eup %1950  ;;  %1428 = vst [vmem:[%s2438_s14 + $0xc8] sm:$0xff] %v1396_v26  ;;  %v1156_v10 = vmul.f32 0.6931472, %v1949_v55  ;;  %v1303_v12 = vmul.f32 %v1943_v1, %v1302_v45 }
 0x199   : > { %1417 = vst [vmem:[%s2438_s14 + $0x70] sm:$0xff] %v1385_v60  ;;  %v1136_v61 = vadd.f32 1.0, %v1951_v8  ;;  %v1953_v2 = vpop.eup %1952  ;;  %v1139_v62 = vmul.f32 -0.5, %v1951_v8 }
 0x19a   : > { %v1162_v19 = vsel %vm1161_vm8, %v1159_v52, %v1156_v10  ;;  %v1280_v54 = vadd.f32 1.0, %v1953_v2  ;;  %v1283_v41 = vmul.f32 -0.5, %v1953_v2  ;;  %v1286_v32 = vand.u32 2147483647, %v1953_v2 }
 0x19b   : > { %v1322_v5 = vsel %vm906_vm9, %v2682_v13, %v1162_v19  ;;  %1962 = vlog2.f32 %v1136_v61  ;;  %v1955_v38 = vpop.eup %1954  ;;  %v1140_v56 = vadd.f32 1.0, %v1139_v62 }
 0x19c   : > { %1964 = vtanh.f32 %v1322_v5  ;;  %v1957_v9 = vpop.eup %1956  ;;  %v1401_v49 = vmul.f32 %v1955_v38, %v2647_v20  ;;  %v1284_v28 = vadd.f32 1.0, %v1283_v41  ;;  %vm1287_vm14 = vcmp.lt.f32.partialorder %v1286_v32, 0.0004427343 }
 0x19d   : > { %v1959_v15 = vpop.eup %1958  ;;  %v1383_v16 = vmul.f32 %v1957_v9, %v2650_v44  ;;  %1966 = vlog2.f32 %v1280_v54  ;;  %v1142_v44 = vand.u32 2147483647, %v1951_v8  ;;  %v1141_v22 = vmul.f32 %v1951_v8, %v1140_v56 }
 0x19e   : > { %v1961_v48 = vpop.eup %1960  ;;  %1433 = vst [vmem:[%s2438_s14 + $0xf0] sm:$0xff] %v1401_v49  ;;  %v1300_v4 = vmul.f32 0.6931472, %v1959_v15  ;;  %v1285_v21 = vmul.f32 %v1953_v2, %v1284_v28 }
 0x19f   : > { %1415 = vst [vmem:[%s2438_s14 + $0x60] sm:$0xff] %v1383_v16  ;;  %v1399_v47 = vmul.f32 %v1961_v48, %v2653_v63  ;;  %vm1143_vm12 = vcmp.lt.f32.partialorder %v1142_v44, 0.0004427343 }
 0x1a0   : > { %v1306_v3 = vsel %vm1305_vm10, %v1303_v12, %v1300_v4 }
 0x1a1   : > { %1431 = vst [vmem:[%s2438_s14 + $0xe0] sm:$0xff] %v1399_v47  ;;  %v1338_v20 = vsel %vm922_vm11, %v2723_v39, %v1306_v3 }
 0x1a2   : > { %1968 = vtanh.f32 %v1338_v20 }
 0x1a5   : > { %v1963_v46 = vpop.eup %1962 }
 0x1a6   : > { %v1965_v0 = vpop.eup %1964  ;;  %v1138_v30 = vmul.f32 0.6931472, %v1963_v46 }
 0x1a7   : > { %v1386_v63 = vmul.f32 %v1965_v0, %v2682_v13  ;;  %v1967_v18 = vpop.eup %1966 }
 0x1a8   : > { %v1144_v57 = vsel %vm1143_vm12, %v1141_v22, %v1138_v30  ;;  %v1282_v33 = vmul.f32 0.6931472, %v1967_v18 }
 0x1a9   : > { %1418 = vst [vmem:[%s2438_s14 + $0x78] sm:$0xff] %v1386_v63  ;;  %v1320_v53 = vsel %vm904_vm13, %v2757_v42, %v1144_v57 }
 0x1aa   : > { %1970 = vtanh.f32 %v1320_v53  ;;  %v1288_v13 = vsel %vm1287_vm14, %v1285_v21, %v1282_v33 }
 0x1ab   : > { %v1336_v23 = vsel %vm920_vm15, %v2782_v11, %v1288_v13 }
 0x1ac   : > { %v1969_v34 = vpop.eup %1968  ;;  %1972 = vtanh.f32 %v1336_v23 }
 0x1ad   : > { %v1402_v37 = vmul.f32 %v1969_v34, %v2723_v39 }
 0x1af   : > { %1434 = vst [vmem:[%s2438_s14 + $0xf8] sm:$0xff] %v1402_v37 }
 0x1b4   : > { %v1971_v35 = vpop.eup %1970 }
 0x1b5   : > { %v1384_v31 = vmul.f32 %v1971_v35, %v2757_v42 }
 0x1b6   : > { %v1973_v24 = vpop.eup %1972 }
 0x1b7   : > { %1416 = vst [vmem:[%s2438_s14 + $0x68] sm:$0xff] %v1384_v31  ;;  %v1400_v39 = vmul.f32 %v1973_v24, %v2782_v11 }
 0x1b9   : > { %1432 = vst [vmem:[%s2438_s14 + $0xe8] sm:$0xff] %v1400_v39 }
 0x1ba   : > { %1989 = shalt.err (!%p1986_p5)
}
 0x1bb   : > { %s1990_s12 = scalar_lea.hbm %s2847_s7, 4096  ;;  %s1994_s21 = scalar_lea.hbm %s2905_s4, 16384 }
 0x1bc   : > { %p1991_p6 = scmp.ne.s32.totalorder %s2847_s7, %s1990_s12  ;;  %p1995_p10 = scmp.lt.u32.totalorder %s2847_s7, %s2905_s4 }
 0x1bd   : > { %p1996_p11 = scmp.lt.u32.totalorder %s1994_s21, %s1990_s12  ;;  %p1998_p13 = scmp.lt.u32.totalorder %s1990_s12, %s2847_s7 }
 0x1be   : > { %p1992_p7 = pnand %p1991_p6, %p2124_p4 }
 0x1bf   : > { %p1997_p12 = por %p1996_p11, %p1995_p10 }
 0x1c0   : > { %p1993_p9 = pneg %p1992_p7 }
 0x1c1   : > { %p1999_p0 = por %p1998_p13, %p1997_p12 }
 0x1c3   : > { %p2000_p1 = pnand %p1999_p0, %p1993_p9 }
 0x1c5   : > { %2003 = shalt.err (!%p2000_p1)
}
 0x1c6   : > { %s2057_s26 = smov 128   ;;  %s2058_s29 = smov 8  }
 0x1c7   : > { %1701 = dma.vmem_to_hbm [thread:$0]  (%p2124_p4), %s2849_s30, 4096, %s2847_s7, %s2855_s18, %s2057_s26, %s2057_s26, %s2058_s29  }
 0x1c8 PF: > { %p1707_p2 = scmp.ge.s32.totalorder %s2054_s20, 2  ;;  %s1465_s5 = sand.u32 1, %s2034_s15  }
 0x1c9   : > { %s1466_s6 = scalar_lea.sflag [#allocation4], %s1465_s5 }
 0x1ca   : > { %p1704_p3 = pnand %p1707_p2, %p2131_p8 }
 0x1cc   : > { %2029 = dma.done.wait (!%p1704_p3), %s1466_s6, 4096  }
 0x1cd   : > { %2031 = vsyncadd (!%p1704_p3), %s1466_s6, 4294963200  ;;  %s17_s20 = sadd.s32 1, %s2054_s20   ;;  %s2959_s15 = smov %s2038_s16 }
 0x1ce   : > { %p14_p5 = scmp.ge.s32.totalorder %s17_s20, 6   ;;  %s2960_s16 = smov %s2042_s17 }
 0x1cf   : > { %s2961_s17 = smov %s2137_s28  ;;  %s2962_s18 = smov %s2050_s19 }
 0x1d0   : > { %s2963_s19 = smov %s2965_s23  ;;  %16 = sbr.rel (!%p14_p5) target bundleno = 4 (0x4), region = 88 }
 0x1d7   :  { %1471 = vsyncpa [#allocation4], 1 }
 0x1d8   :  { %1473 = vsyncpa [#allocation4 + $0x1], 1 }

</bundles_post_ra>
